<compile_context>
chip_gen: v6e
topology: v6e:2x2x1
jax: 0.10.0
libtpu: 0.0.40
codegen_flags: <defaults>
</compile_context>

<pallas_src>
import functools

import jax
import jax.numpy as jnp
from jax.experimental import pallas as pl
from jax.experimental.pallas import tpu as pltpu


def _layer_norm(x, gamma, beta, eps=1e-5):
    # x: (M, E); gamma/beta: (1, E).  PyTorch LayerNorm uses biased variance.
    mu = jnp.mean(x, axis=-1, keepdims=True)
    var = jnp.mean((x - mu) ** 2, axis=-1, keepdims=True)
    return (x - mu) * jax.lax.rsqrt(var + eps) * gamma + beta


def encoder_stack_kernel(
    x_ref, mask_ref,
    wqkv_ref, wo_ref, bo_ref,
    ln1g_ref, ln1b_ref, ln2g_ref, ln2b_ref,
    w1_ref, b1_ref, w2_ref, b2_ref,
    out_ref,
    act_ref,
    *, heads, head_dim, embed_size, seq_len, batch_block,
):
    H, D, E, L, Nb = heads, head_dim, embed_size, seq_len, batch_block
    M = Nb * L
    layer = pl.program_id(1)

    # Layer 0: pull this batch block's embeddings into the resident VMEM
    # activation buffer; they stay there for the whole layer stack.
    @pl.when(layer == 0)
    def _():
        act_ref[...] = x_ref[...].reshape(M, E)

    x2d = act_ref[...]                       # (M, E) float32 activations
    cdt = wqkv_ref.dtype                     # MXU compute dtype (bfloat16)

    # ---------------- self-attention --------------------------------------
    # Fused QKV: one lane-dense (M, E) @ (E, 3E) MXU pass against the
    # block-diagonal [Wq | Wk | Wv] built in the wrapper.
    qkv = jnp.dot(x2d.astype(cdt), wqkv_ref[0],
                  preferred_element_type=jnp.float32)            # (M, 3E)

    # Head split: (M, 3E) -> (3H, M, D); q/k/v are leading-axis slices, then
    # (H, Nb*L, D) -> (H*Nb, L, D) so head(+batch) is the einsum batch axis.
    t = pltpu.einshape("mhd->hmd", qkv.reshape(M, 3 * H, D))     # (3H, M, D)
    q = t[0:H].reshape(H * Nb, L, D)
    k = t[H:2 * H].reshape(H * Nb, L, D)
    v = t[2 * H:3 * H].reshape(H * Nb, L, D)

    energy = jnp.einsum("bqd,bkd->bqk", q.astype(cdt), k.astype(cdt),
                        preferred_element_type=jnp.float32)      # (H*Nb, L, L)

    mask = mask_ref[...]                                         # (Nb, 1, L)
    if Nb == 1:
        mask_b = mask                        # (1, 1, L) broadcasts over heads
    else:
        mask_b = jnp.broadcast_to(mask[None], (H,) + mask.shape)
        mask_b = mask_b.reshape(H * Nb, 1, L)

    # masked_fill(mask == 0, -1e20) then scale by 1/sqrt(embed_size) --
    # this order and scale match the reference PyTorch module.
    energy = jnp.where(mask_b == 0.0, jnp.float32(-1e20), energy)
    energy = energy * (1.0 / (float(E) ** 0.5))

    # softmax in f32; reciprocal goes to the otherwise-idle EUP slot.
    m = jnp.max(energy, axis=-1, keepdims=True)
    e = jnp.exp(energy - m)
    att = e * pl.reciprocal(jnp.sum(e, axis=-1, keepdims=True), approx=True)

    ctx = jnp.einsum("bqk,bkd->bqd", att.astype(cdt), v.astype(cdt),
                     preferred_element_type=jnp.float32)         # (H*Nb, L, D)
    ctx = pltpu.einshape("hmd->mhd", ctx.reshape(H, M, D)).reshape(M, E)

    attn = jnp.dot(ctx.astype(cdt), wo_ref[0],
                   preferred_element_type=jnp.float32) + bo_ref[0]

    # residual + LayerNorm 1 (dropout == identity in eval mode)
    x1 = _layer_norm(attn + x2d, ln1g_ref[0], ln1b_ref[0])

    # ---------------- feed-forward: Linear -> ReLU -> Linear ---------------
    h1 = jnp.maximum(
        jnp.dot(x1.astype(cdt), w1_ref[0],
                preferred_element_type=jnp.float32) + b1_ref[0], 0.0)
    ff = jnp.dot(h1.astype(cdt), w2_ref[0],
                 preferred_element_type=jnp.float32) + b2_ref[0]

    # residual + LayerNorm 2 (dropout == identity)
    y = _layer_norm(ff + x1, ln2g_ref[0], ln2b_ref[0])

    act_ref[...] = y                          # feed the next layer (in VMEM)

    @pl.when(layer == pl.num_programs(1) - 1)
    def _():
        out_ref[...] = y.reshape(Nb, L, E).astype(out_ref.dtype)


def encoder_stack(x, mask, packed, *, heads, batch_block=None, interpret=False):
    """Runs the full TransformerBlock stack in ONE pallas_call."""
    N, L, E = x.shape
    num_layers, _, three_e = packed["wqkv"].shape
    assert three_e == 3 * E
    F = packed["w1"].shape[-1]
    head_dim = E // heads

    if batch_block is None:
        # >= 2 parallel grid blocks whenever N >= 2 (feeds both v7x TCs);
        # larger N packs several batch rows per step to amortize overhead.
        batch_block = max(1, min(8, N // 2)) if N >= 2 else 1
    grid_b = pl.cdiv(N, batch_block)
    n_pad = grid_b * batch_block
    if n_pad != N:
        x = jnp.pad(x, ((0, n_pad - N), (0, 0), (0, 0)))
        mask = jnp.pad(mask, ((0, n_pad - N), (0, 0), (0, 0)))

    kernel = functools.partial(
        encoder_stack_kernel,
        heads=heads, head_dim=head_dim, embed_size=E, seq_len=L,
        batch_block=batch_block)

    bidx = lambda b, l: (b, 0, 0)     # batch-indexed blocks
    lidx = lambda b, l: (l, 0, 0)     # layer-indexed (stacked weight) blocks
    in_specs = [
        pl.BlockSpec((batch_block, L, E), bidx),       # x (embeddings)
        pl.BlockSpec((batch_block, 1, L), bidx),       # mask
        pl.BlockSpec((1, E, 3 * E), lidx),             # fused [Wq|Wk|Wv]
        pl.BlockSpec((1, E, E), lidx),                 # Wo
        pl.BlockSpec((1, 1, E), lidx),                 # bo
        pl.BlockSpec((1, 1, E), lidx),                 # ln1 gamma
        pl.BlockSpec((1, 1, E), lidx),                 # ln1 beta
        pl.BlockSpec((1, 1, E), lidx),                 # ln2 gamma
        pl.BlockSpec((1, 1, E), lidx),                 # ln2 beta
        pl.BlockSpec((1, E, F), lidx),                 # W1
        pl.BlockSpec((1, 1, F), lidx),                 # b1
        pl.BlockSpec((1, F, E), lidx),                 # W2
        pl.BlockSpec((1, 1, E), lidx),                 # b2
    ]

    out = pl.pallas_call(
        kernel,
        out_shape=jax.ShapeDtypeStruct((n_pad, L, E), jnp.float32),
        grid_spec=pltpu.PrefetchScalarGridSpec(
            num_scalar_prefetch=0,
            grid=(grid_b, num_layers),
            in_specs=in_specs,
            out_specs=pl.BlockSpec((batch_block, L, E), bidx),
            scratch_shapes=[pltpu.VMEM((batch_block * L, E), jnp.float32)],
        ),
        compiler_params=pltpu.CompilerParams(
            dimension_semantics=("parallel", "arbitrary")),
        interpret=interpret,
    )(x, mask,
      packed["wqkv"], packed["wo"], packed["bo"],
      packed["ln1_g"], packed["ln1_b"], packed["ln2_g"], packed["ln2_b"],
      packed["w1"], packed["b1"], packed["w2"], packed["b2"])
    return out[:N]


def init_encoder_params(key, *, src_vocab_size, embed_size, num_layers,
                        heads, forward_expansion, max_length):
    """Parameters mirroring the PyTorch Encoder (weights stored [in, out])."""
    head_dim = embed_size // heads
    assert head_dim * heads == embed_size
    F = forward_expansion * embed_size
    keys = jax.random.split(key, 2 + num_layers)

    def nrm(k, shape, scale=0.02):
        return (scale * jax.random.normal(k, shape)).astype(jnp.float32)

    params = {
        "word_emb": nrm(keys[0], (src_vocab_size, embed_size), 1.0),
        "pos_emb": nrm(keys[1], (max_length, embed_size), 1.0),
        "layers": [],
    }
    for l in range(num_layers):
        lk = jax.random.split(keys[2 + l], 8)
        params["layers"].append({
            "wq": nrm(lk[0], (head_dim, head_dim)),
            "wk": nrm(lk[1], (head_dim, head_dim)),
            "wv": nrm(lk[2], (head_dim, head_dim)),
            "wo": nrm(lk[3], (embed_size, embed_size)),
            "bo": nrm(lk[4], (1, embed_size)),
            "ln1_g": jnp.ones((1, embed_size), jnp.float32),
            "ln1_b": jnp.zeros((1, embed_size), jnp.float32),
            "ln2_g": jnp.ones((1, embed_size), jnp.float32),
            "ln2_b": jnp.zeros((1, embed_size), jnp.float32),
            "w1": nrm(lk[5], (embed_size, F)),
            "b1": nrm(lk[6], (1, F)),
            "w2": nrm(lk[7], (F, embed_size)),
            "b2": jnp.zeros((1, embed_size), jnp.float32),
        })
    return params


def pack_encoder_params(params, *, heads, compute_dtype=jnp.bfloat16):
    """Stack per-layer params along [num_layers, ...] and fuse the shared
    per-head (D, D) Q/K/V weights into one block-diagonal (E, 3E) matrix
    (identical arithmetic to applying the head weight to each head slice).
    Matmul weights go to bf16 for the MXU; biases / LayerNorm stay f32."""
    layers = params["layers"]
    eye = jnp.eye(heads, dtype=jnp.float32)

    def fused_qkv(p):
        bd = lambda w: jnp.kron(eye, w)                 # (E, E) block-diagonal
        return jnp.concatenate([bd(p["wq"]), bd(p["wk"]), bd(p["wv"])], axis=1)

    stack = lambda name: jnp.stack([p[name] for p in layers])
    return {
        "wqkv": jnp.stack([fused_qkv(p) for p in layers]).astype(compute_dtype),
        "wo": stack("wo").astype(compute_dtype),
        "bo": stack("bo"),
        "ln1_g": stack("ln1_g"), "ln1_b": stack("ln1_b"),
        "ln2_g": stack("ln2_g"), "ln2_b": stack("ln2_b"),
        "w1": stack("w1").astype(compute_dtype),
        "b1": stack("b1"),
        "w2": stack("w2").astype(compute_dtype),
        "b2": stack("b2"),
    }


def encoder_forward(params, packed, x_tokens, mask, *, heads, batch_block=None):
    # x_tokens: (N, L) int32 token ids; mask: (N, 1, L) float32 (0 => masked).
    N, L = x_tokens.shape
    # Embedding lookups stay in plain JAX (gather); dropout == identity.
    word = jnp.take(params["word_emb"], x_tokens, axis=0)       # (N, L, E)
    pos = params["pos_emb"][:L]                                 # (L, E)
    x = (word + pos[None, :, :]).astype(jnp.float32)
    return encoder_stack(x, mask, packed, heads=heads, batch_block=batch_block)


def encoder_reference(params, x_tokens, mask, *, heads):
    """Pure-JAX f32 reference implementing the PyTorch forward verbatim."""
    word = jnp.take(params["word_emb"], x_tokens, axis=0)
    L = x_tokens.shape[1]
    out = word + params["pos_emb"][:L][None]
    E = out.shape[-1]
    D = E // heads

    def ln(x, g, b, eps=1e-5):
        mu = jnp.mean(x, -1, keepdims=True)
        var = jnp.mean((x - mu) ** 2, -1, keepdims=True)
        return (x - mu) / jnp.sqrt(var + eps) * g + b

    for p in params["layers"]:
        x = out
        n, l, _ = x.shape
        xh = x.reshape(n, l, heads, D)
        q = xh @ p["wq"]
        k = xh @ p["wk"]
        v = xh @ p["wv"]
        energy = jnp.einsum("nqhd,nkhd->nhqk", q, k)
        energy = jnp.where(mask[:, None, :, :] == 0, -1e20, energy)
        att = jax.nn.softmax(energy / (E ** 0.5), axis=-1)
        ctx = jnp.einsum("nhqk,nkhd->nqhd", att, v).reshape(n, l, E)
        attn = ctx @ p["wo"] + p["bo"]
        x1 = ln(attn + x, p["ln1_g"], p["ln1_b"])
        h1 = jax.nn.relu(x1 @ p["w1"] + p["b1"])
        ff = h1 @ p["w2"] + p["b2"]
        out = ln(ff + x1, p["ln2_g"], p["ln2_b"])
    return out


if __name__ == "__main__":
    # Small, module-consistent shapes.
    src_vocab_size = 50
    embed_size = 32
    num_layers = 2
    heads = 4
    forward_expansion = 2
    max_length = 16
    N, L = 2, 8

    key = jax.random.PRNGKey(0)
    pkey, xkey = jax.random.split(key)

    params = init_encoder_params(
        pkey, src_vocab_size=src_vocab_size, embed_size=embed_size,
        num_layers=num_layers, heads=heads,
        forward_expansion=forward_expansion, max_length=max_length)
    packed = pack_encoder_params(params, heads=heads)

    x_tokens = jax.random.randint(xkey, (N, L), 0, src_vocab_size,
                                  dtype=jnp.int32)
    mask = jnp.ones((N, 1, L), jnp.float32).at[1, 0, L - 1].set(0.0)

    out = encoder_forward(params, packed, x_tokens, mask, heads=heads)
    jax.block_until_ready(out)
    assert out.shape == (N, L, embed_size)

    # Quiet sanity check vs. the pure-JAX f32 reference (bf16 matmuls +
    # approx softmax reciprocal -> loose tolerance).
    ref = encoder_reference(params, x_tokens, mask, heads=heads)
    max_err = float(jnp.max(jnp.abs(out - ref)))
    assert max_err < 5e-2, f"max abs error vs reference: {max_err}"

    print("KERNEL_OK")
</pallas_src>

<mosaic_0001>
module attributes {stable_mosaic.version = 11 : i64} {
  func.func @encoder_stack_kernel(%arg0: i32, %arg1: i32, %arg2: memref<1x8x32xf32, #tpu.memory_space<vmem>>, %arg3: memref<1x1x8xf32, #tpu.memory_space<vmem>>, %arg4: memref<1x32x96xbf16, #tpu.memory_space<vmem>>, %arg5: memref<1x32x32xbf16, #tpu.memory_space<vmem>>, %arg6: memref<1x1x32xf32, #tpu.memory_space<vmem>>, %arg7: memref<1x1x32xf32, #tpu.memory_space<vmem>>, %arg8: memref<1x1x32xf32, #tpu.memory_space<vmem>>, %arg9: memref<1x1x32xf32, #tpu.memory_space<vmem>>, %arg10: memref<1x1x32xf32, #tpu.memory_space<vmem>>, %arg11: memref<1x32x64xbf16, #tpu.memory_space<vmem>>, %arg12: memref<1x1x64xf32, #tpu.memory_space<vmem>>, %arg13: memref<1x64x32xbf16, #tpu.memory_space<vmem>>, %arg14: memref<1x1x32xf32, #tpu.memory_space<vmem>>, %arg15: memref<1x8x32xf32, #tpu.memory_space<vmem>>, %arg16: memref<8x32xf32, #tpu.memory_space<vmem>>) attributes {dimension_semantics = [#tpu.dimension_semantics<parallel>, #tpu.dimension_semantics<arbitrary>], iteration_bounds = array<i64: 2, 2>, scalar_prefetch = 0 : i64, scratch_operands = 1 : i64, tpu.core_type = #tpu.core_type<tc>, window_params = [{transform_indices = @transform_0, window_bounds = array<i64: 1, 8, 32>}, {transform_indices = @transform_1, window_bounds = array<i64: 1, 1, 8>}, {transform_indices = @transform_2, window_bounds = array<i64: 1, 32, 96>}, {transform_indices = @transform_3, window_bounds = array<i64: 1, 32, 32>}, {transform_indices = @transform_4, window_bounds = array<i64: 1, 1, 32>}, {transform_indices = @transform_5, window_bounds = array<i64: 1, 1, 32>}, {transform_indices = @transform_6, window_bounds = array<i64: 1, 1, 32>}, {transform_indices = @transform_7, window_bounds = array<i64: 1, 1, 32>}, {transform_indices = @transform_8, window_bounds = array<i64: 1, 1, 32>}, {transform_indices = @transform_9, window_bounds = array<i64: 1, 32, 64>}, {transform_indices = @transform_10, window_bounds = array<i64: 1, 1, 64>}, {transform_indices = @transform_11, window_bounds = array<i64: 1, 64, 32>}, {transform_indices = @transform_12, window_bounds = array<i64: 1, 1, 32>}, {transform_indices = @transform_13, window_bounds = array<i64: 1, 8, 32>}]} {
    %c0_i32 = arith.constant 0 : i32
    %0 = arith.cmpi eq, %arg1, %c0_i32 : i32
    %1 = arith.extui %0 : i1 to i32
    %c0_i32_0 = arith.constant 0 : i32
    %2 = arith.cmpi ne, %1, %c0_i32_0 : i32
    scf.if %2 {
      %c0_62 = arith.constant 0 : index
      %c0_63 = arith.constant 0 : index
      %c0_64 = arith.constant 0 : index
      %124 = vector.load %arg2[%c0_62, %c0_63, %c0_64] : memref<1x8x32xf32, #tpu.memory_space<vmem>>, vector<1x8x32xf32>
      %125 = vector.shape_cast %124 : vector<1x8x32xf32> to vector<8x32xf32>
      %c0_65 = arith.constant 0 : index
      %c0_66 = arith.constant 0 : index
      %126 = vector.load %arg16[%c0_65, %c0_66] : memref<8x32xf32, #tpu.memory_space<vmem>>, vector<8x32xf32>
      tpu.vector_store %arg16[%c0_65, %c0_66], %125 {strides = array<i32>} : memref<8x32xf32, #tpu.memory_space<vmem>>, vector<8x32xf32>,
    } else {
    }
    %c0 = arith.constant 0 : index
    %c0_1 = arith.constant 0 : index
    %3 = vector.load %arg16[%c0, %c0_1] : memref<8x32xf32, #tpu.memory_space<vmem>>, vector<8x32xf32>
    %4 = arith.truncf %3 : vector<8x32xf32> to vector<8x32xbf16>
    %c0_2 = arith.constant 0 : index
    %c0_3 = arith.constant 0 : index
    %c0_4 = arith.constant 0 : index
    %5 = vector.load %arg4[%c0_2, %c0_3, %c0_4] : memref<1x32x96xbf16, #tpu.memory_space<vmem>>, vector<1x32x96xbf16>
    %6 = vector.shape_cast %5 : vector<1x32x96xbf16> to vector<32x96xbf16>
    %cst = arith.constant dense<0.000000e+00> : vector<8x96xf32>
    %7 = tpu.matmul %4, %6, %cst {dimension_numbers = #tpu.dot_dimension_numbers<[1], [0], [0], [1], [0, 0, 1, 1], [], []>} : vector<8x32xbf16>, vector<32x96xbf16>, vector<8x96xf32> -> vector<8x96xf32>
    %8 = vector.shape_cast %7 : vector<8x96xf32> to vector<8x12x8xf32>
    %9 = tpu.transpose %8, [1, 0, 2] : vector<8x12x8xf32> -> vector<12x8x8xf32>
    %10 = vector.extract_strided_slice %9 {offsets = [0, 0, 0], sizes = [4, 8, 8], strides = [1, 1, 1]} : vector<12x8x8xf32> to vector<4x8x8xf32>
    %11 = vector.extract_strided_slice %9 {offsets = [4, 0, 0], sizes = [4, 8, 8], strides = [1, 1, 1]} : vector<12x8x8xf32> to vector<4x8x8xf32>
    %12 = vector.extract_strided_slice %9 {offsets = [8, 0, 0], sizes = [4, 8, 8], strides = [1, 1, 1]} : vector<12x8x8xf32> to vector<4x8x8xf32>
    %13 = arith.truncf %10 : vector<4x8x8xf32> to vector<4x8x8xbf16>
    %14 = arith.truncf %11 : vector<4x8x8xf32> to vector<4x8x8xbf16>
    "tpu.trace_start"() <{level = 10 : i32, message = "bqd,bkd->bqk"}> : () -> ()
    %cst_5 = arith.constant dense<0.000000e+00> : vector<4x8x8xf32>
    %15 = tpu.matmul %13, %14, %cst_5 {dimension_numbers = #tpu.dot_dimension_numbers<[2], [2], [1], [1], [0, 0, 0, 1, 1, 1], [0], [0]>} : vector<4x8x8xbf16>, vector<4x8x8xbf16>, vector<4x8x8xf32> -> vector<4x8x8xf32>
    "tpu.trace_stop"() : () -> ()
    %c0_6 = arith.constant 0 : index
    %c0_7 = arith.constant 0 : index
    %c0_8 = arith.constant 0 : index
    %16 = vector.load %arg3[%c0_6, %c0_7, %c0_8] : memref<1x1x8xf32, #tpu.memory_space<vmem>>, vector<1x1x8xf32>
    %cst_9 = arith.constant 0.000000e+00 : f32
    %17 = vector.broadcast %cst_9 : f32 to vector<1x1x8xf32>
    %18 = arith.cmpf oeq, %16, %17 : vector<1x1x8xf32>
    %cst_10 = arith.constant -1.000000e+20 : f32
    %19 = vector.shape_cast %18 : vector<1x1x8xi1> to vector<1x1x8xi1>
    %20 = vector.broadcast %19 : vector<1x1x8xi1> to vector<4x8x8xi1>
    %21 = vector.broadcast %cst_10 : f32 to vector<4x8x8xf32>
    %22 = arith.select %20, %21, %15 : vector<4x8x8xi1>, vector<4x8x8xf32>
    %cst_11 = arith.constant 0.176776692 : f32
    %23 = vector.broadcast %cst_11 : f32 to vector<4x8x8xf32>
    %24 = arith.mulf %22, %23 : vector<4x8x8xf32>
    %cst_12 = arith.constant dense<0xFF800000> : vector<4x8xf32>
    %25 = vector.multi_reduction <maximumf>, %24, %cst_12 [2] : vector<4x8x8xf32> to vector<4x8xf32>
    %26 = vector.shape_cast %25 : vector<4x8xf32> to vector<4x8x1xf32>
    %27 = vector.broadcast %26 : vector<4x8x1xf32> to vector<4x8x8xf32>
    %28 = arith.subf %24, %27 : vector<4x8x8xf32>
    %29 = math.exp %28 : vector<4x8x8xf32>
    %cst_13 = arith.constant dense<0.000000e+00> : vector<4x8xf32>
    %30 = vector.multi_reduction <add>, %29, %cst_13 [2] : vector<4x8x8xf32> to vector<4x8xf32>
    %31 = vector.shape_cast %30 : vector<4x8xf32> to vector<4x8x1xf32>
    %32 = tpu.reciprocal %31 {approx = true} : vector<4x8x1xf32> -> vector<4x8x1xf32>
    %33 = vector.broadcast %32 : vector<4x8x1xf32> to vector<4x8x8xf32>
    %34 = arith.mulf %29, %33 : vector<4x8x8xf32>
    %35 = arith.truncf %34 : vector<4x8x8xf32> to vector<4x8x8xbf16>
    %36 = arith.truncf %12 : vector<4x8x8xf32> to vector<4x8x8xbf16>
    "tpu.trace_start"() <{level = 10 : i32, message = "bqk,bkd->bqd"}> : () -> ()
    %cst_14 = arith.constant dense<0.000000e+00> : vector<4x8x8xf32>
    %37 = tpu.matmul %35, %36, %cst_14 {dimension_numbers = #tpu.dot_dimension_numbers<[2], [1], [1], [2], [0, 0, 0, 1, 1, 2], [0], [0]>} : vector<4x8x8xbf16>, vector<4x8x8xbf16>, vector<4x8x8xf32> -> vector<4x8x8xf32>
    "tpu.trace_stop"() : () -> ()
    %38 = tpu.transpose %37, [1, 0, 2] : vector<4x8x8xf32> -> vector<8x4x8xf32>
    %39 = vector.shape_cast %38 : vector<8x4x8xf32> to vector<8x32xf32>
    %40 = arith.truncf %39 : vector<8x32xf32> to vector<8x32xbf16>
    %c0_15 = arith.constant 0 : index
    %c0_16 = arith.constant 0 : index
    %c0_17 = arith.constant 0 : index
    %41 = vector.load %arg5[%c0_15, %c0_16, %c0_17] : memref<1x32x32xbf16, #tpu.memory_space<vmem>>, vector<1x32x32xbf16>
    %42 = vector.shape_cast %41 : vector<1x32x32xbf16> to vector<32x32xbf16>
    %cst_18 = arith.constant dense<0.000000e+00> : vector<8x32xf32>
    %43 = tpu.matmul %40, %42, %cst_18 {dimension_numbers = #tpu.dot_dimension_numbers<[1], [0], [0], [1], [0, 0, 1, 1], [], []>} : vector<8x32xbf16>, vector<32x32xbf16>, vector<8x32xf32> -> vector<8x32xf32>
    %c0_19 = arith.constant 0 : index
    %c0_20 = arith.constant 0 : index
    %c0_21 = arith.constant 0 : index
    %44 = vector.load %arg6[%c0_19, %c0_20, %c0_21] : memref<1x1x32xf32, #tpu.memory_space<vmem>>, vector<1x1x32xf32>
    %45 = vector.shape_cast %44 : vector<1x1x32xf32> to vector<1x32xf32>
    %46 = vector.broadcast %45 : vector<1x32xf32> to vector<8x32xf32>
    %47 = arith.addf %43, %46 : vector<8x32xf32>
    %48 = arith.addf %47, %3 : vector<8x32xf32>
    %c0_22 = arith.constant 0 : index
    %c0_23 = arith.constant 0 : index
    %c0_24 = arith.constant 0 : index
    %49 = vector.load %arg7[%c0_22, %c0_23, %c0_24] : memref<1x1x32xf32, #tpu.memory_space<vmem>>, vector<1x1x32xf32>
    %50 = vector.shape_cast %49 : vector<1x1x32xf32> to vector<1x32xf32>
    %c0_25 = arith.constant 0 : index
    %c0_26 = arith.constant 0 : index
    %c0_27 = arith.constant 0 : index
    %51 = vector.load %arg8[%c0_25, %c0_26, %c0_27] : memref<1x1x32xf32, #tpu.memory_space<vmem>>, vector<1x1x32xf32>
    %52 = vector.shape_cast %51 : vector<1x1x32xf32> to vector<1x32xf32>
    %cst_28 = arith.constant dense<0.000000e+00> : vector<8xf32>
    %53 = vector.multi_reduction <add>, %48, %cst_28 [1] : vector<8x32xf32> to vector<8xf32>
    %54 = vector.shape_cast %53 : vector<8xf32> to vector<8x1xf32>
    %cst_29 = arith.constant 3.200000e+01 : f32
    %55 = vector.broadcast %cst_29 : f32 to vector<8x1xf32>
    %56 = arith.divf %54, %55 : vector<8x1xf32>
    %57 = vector.broadcast %56 : vector<8x1xf32> to vector<8x32xf32>
    %58 = arith.subf %48, %57 : vector<8x32xf32>
    %59 = arith.mulf %58, %58 : vector<8x32xf32>
    %cst_30 = arith.constant dense<0.000000e+00> : vector<8xf32>
    %60 = vector.multi_reduction <add>, %59, %cst_30 [1] : vector<8x32xf32> to vector<8xf32>
    %61 = vector.shape_cast %60 : vector<8xf32> to vector<8x1xf32>
    %cst_31 = arith.constant 3.200000e+01 : f32
    %62 = vector.broadcast %cst_31 : f32 to vector<8x1xf32>
    %63 = arith.divf %61, %62 : vector<8x1xf32>
    %64 = vector.broadcast %56 : vector<8x1xf32> to vector<8x32xf32>
    %65 = arith.subf %48, %64 : vector<8x32xf32>
    %cst_32 = arith.constant 9.99999974E-6 : f32
    %66 = vector.broadcast %cst_32 : f32 to vector<8x1xf32>
    %67 = arith.addf %63, %66 : vector<8x1xf32>
    %68 = math.rsqrt %67 : vector<8x1xf32>
    %69 = vector.broadcast %68 : vector<8x1xf32> to vector<8x32xf32>
    %70 = arith.mulf %65, %69 : vector<8x32xf32>
    %71 = vector.broadcast %50 : vector<1x32xf32> to vector<8x32xf32>
    %72 = arith.mulf %70, %71 : vector<8x32xf32>
    %73 = vector.broadcast %52 : vector<1x32xf32> to vector<8x32xf32>
    %74 = arith.addf %72, %73 : vector<8x32xf32>
    %75 = arith.truncf %74 : vector<8x32xf32> to vector<8x32xbf16>
    %c0_33 = arith.constant 0 : index
    %c0_34 = arith.constant 0 : index
    %c0_35 = arith.constant 0 : index
    %76 = vector.load %arg11[%c0_33, %c0_34, %c0_35] : memref<1x32x64xbf16, #tpu.memory_space<vmem>>, vector<1x32x64xbf16>
    %77 = vector.shape_cast %76 : vector<1x32x64xbf16> to vector<32x64xbf16>
    %cst_36 = arith.constant dense<0.000000e+00> : vector<8x64xf32>
    %78 = tpu.matmul %75, %77, %cst_36 {dimension_numbers = #tpu.dot_dimension_numbers<[1], [0], [0], [1], [0, 0, 1, 1], [], []>} : vector<8x32xbf16>, vector<32x64xbf16>, vector<8x64xf32> -> vector<8x64xf32>
    %c0_37 = arith.constant 0 : index
    %c0_38 = arith.constant 0 : index
    %c0_39 = arith.constant 0 : index
    %79 = vector.load %arg12[%c0_37, %c0_38, %c0_39] : memref<1x1x64xf32, #tpu.memory_space<vmem>>, vector<1x1x64xf32>
    %80 = vector.shape_cast %79 : vector<1x1x64xf32> to vector<1x64xf32>
    %81 = vector.broadcast %80 : vector<1x64xf32> to vector<8x64xf32>
    %82 = arith.addf %78, %81 : vector<8x64xf32>
    %cst_40 = arith.constant 0.000000e+00 : f32
    %83 = vector.broadcast %cst_40 : f32 to vector<8x64xf32>
    %84 = arith.maximumf %82, %83 : vector<8x64xf32>
    %85 = arith.truncf %84 : vector<8x64xf32> to vector<8x64xbf16>
    %c0_41 = arith.constant 0 : index
    %c0_42 = arith.constant 0 : index
    %c0_43 = arith.constant 0 : index
    %86 = vector.load %arg13[%c0_41, %c0_42, %c0_43] : memref<1x64x32xbf16, #tpu.memory_space<vmem>>, vector<1x64x32xbf16>
    %87 = vector.shape_cast %86 : vector<1x64x32xbf16> to vector<64x32xbf16>
    %cst_44 = arith.constant dense<0.000000e+00> : vector<8x32xf32>
    %88 = tpu.matmul %85, %87, %cst_44 {dimension_numbers = #tpu.dot_dimension_numbers<[1], [0], [0], [1], [0, 0, 1, 1], [], []>} : vector<8x64xbf16>, vector<64x32xbf16>, vector<8x32xf32> -> vector<8x32xf32>
    %c0_45 = arith.constant 0 : index
    %c0_46 = arith.constant 0 : index
    %c0_47 = arith.constant 0 : index
    %89 = vector.load %arg14[%c0_45, %c0_46, %c0_47] : memref<1x1x32xf32, #tpu.memory_space<vmem>>, vector<1x1x32xf32>
    %90 = vector.shape_cast %89 : vector<1x1x32xf32> to vector<1x32xf32>
    %91 = vector.broadcast %90 : vector<1x32xf32> to vector<8x32xf32>
    %92 = arith.addf %88, %91 : vector<8x32xf32>
    %93 = arith.addf %92, %74 : vector<8x32xf32>
    %c0_48 = arith.constant 0 : index
    %c0_49 = arith.constant 0 : index
    %c0_50 = arith.constant 0 : index
    %94 = vector.load %arg9[%c0_48, %c0_49, %c0_50] : memref<1x1x32xf32, #tpu.memory_space<vmem>>, vector<1x1x32xf32>
    %95 = vector.shape_cast %94 : vector<1x1x32xf32> to vector<1x32xf32>
    %c0_51 = arith.constant 0 : index
    %c0_52 = arith.constant 0 : index
    %c0_53 = arith.constant 0 : index
    %96 = vector.load %arg10[%c0_51, %c0_52, %c0_53] : memref<1x1x32xf32, #tpu.memory_space<vmem>>, vector<1x1x32xf32>
    %97 = vector.shape_cast %96 : vector<1x1x32xf32> to vector<1x32xf32>
    %cst_54 = arith.constant dense<0.000000e+00> : vector<8xf32>
    %98 = vector.multi_reduction <add>, %93, %cst_54 [1] : vector<8x32xf32> to vector<8xf32>
    %99 = vector.shape_cast %98 : vector<8xf32> to vector<8x1xf32>
    %cst_55 = arith.constant 3.200000e+01 : f32
    %100 = vector.broadcast %cst_55 : f32 to vector<8x1xf32>
    %101 = arith.divf %99, %100 : vector<8x1xf32>
    %102 = vector.broadcast %101 : vector<8x1xf32> to vector<8x32xf32>
    %103 = arith.subf %93, %102 : vector<8x32xf32>
    %104 = arith.mulf %103, %103 : vector<8x32xf32>
    %cst_56 = arith.constant dense<0.000000e+00> : vector<8xf32>
    %105 = vector.multi_reduction <add>, %104, %cst_56 [1] : vector<8x32xf32> to vector<8xf32>
    %106 = vector.shape_cast %105 : vector<8xf32> to vector<8x1xf32>
    %cst_57 = arith.constant 3.200000e+01 : f32
    %107 = vector.broadcast %cst_57 : f32 to vector<8x1xf32>
    %108 = arith.divf %106, %107 : vector<8x1xf32>
    %109 = vector.broadcast %101 : vector<8x1xf32> to vector<8x32xf32>
    %110 = arith.subf %93, %109 : vector<8x32xf32>
    %cst_58 = arith.constant 9.99999974E-6 : f32
    %111 = vector.broadcast %cst_58 : f32 to vector<8x1xf32>
    %112 = arith.addf %108, %111 : vector<8x1xf32>
    %113 = math.rsqrt %112 : vector<8x1xf32>
    %114 = vector.broadcast %113 : vector<8x1xf32> to vector<8x32xf32>
    %115 = arith.mulf %110, %114 : vector<8x32xf32>
    %116 = vector.broadcast %95 : vector<1x32xf32> to vector<8x32xf32>
    %117 = arith.mulf %115, %116 : vector<8x32xf32>
    %118 = vector.broadcast %97 : vector<1x32xf32> to vector<8x32xf32>
    %119 = arith.addf %117, %118 : vector<8x32xf32>
    %c0_59 = arith.constant 0 : index
    %c0_60 = arith.constant 0 : index
    %120 = vector.load %arg16[%c0_59, %c0_60] : memref<8x32xf32, #tpu.memory_space<vmem>>, vector<8x32xf32>
    tpu.vector_store %arg16[%c0_59, %c0_60], %119 {strides = array<i32>} : memref<8x32xf32, #tpu.memory_space<vmem>>, vector<8x32xf32>,
    %c1_i32 = arith.constant 1 : i32
    %121 = arith.cmpi eq, %arg1, %c1_i32 : i32
    %122 = arith.extui %121 : i1 to i32
    %c0_i32_61 = arith.constant 0 : i32
    %123 = arith.cmpi ne, %122, %c0_i32_61 : i32
    scf.if %123 {
      %124 = vector.shape_cast %119 : vector<8x32xf32> to vector<1x8x32xf32>
      %c0_62 = arith.constant 0 : index
      %c0_63 = arith.constant 0 : index
      %c0_64 = arith.constant 0 : index
      %125 = vector.load %arg15[%c0_62, %c0_63, %c0_64] : memref<1x8x32xf32, #tpu.memory_space<vmem>>, vector<1x8x32xf32>
      tpu.vector_store %arg15[%c0_62, %c0_63, %c0_64], %124 {strides = array<i32>} : memref<1x8x32xf32, #tpu.memory_space<vmem>>, vector<1x8x32xf32>,
    } else {
    }
    return
  }
  func.func @transform_0(%arg0: i32, %arg1: i32) -> (i32, i32, i32) {
    %c0_i32 = arith.constant 0 : i32
    %c0_i32_0 = arith.constant 0 : i32
    %c0_i32_1 = arith.constant 0 : i32
    return %arg0, %c0_i32, %c0_i32_0 : i32, i32, i32
  }
  func.func @transform_1(%arg0: i32, %arg1: i32) -> (i32, i32, i32) {
    %c0_i32 = arith.constant 0 : i32
    %c0_i32_0 = arith.constant 0 : i32
    %c0_i32_1 = arith.constant 0 : i32
    return %arg0, %c0_i32, %c0_i32_0 : i32, i32, i32
  }
  func.func @transform_2(%arg0: i32, %arg1: i32) -> (i32, i32, i32) {
    %c0_i32 = arith.constant 0 : i32
    %c0_i32_0 = arith.constant 0 : i32
    %c0_i32_1 = arith.constant 0 : i32
    return %arg1, %c0_i32, %c0_i32_0 : i32, i32, i32
  }
  func.func @transform_3(%arg0: i32, %arg1: i32) -> (i32, i32, i32) {
    %c0_i32 = arith.constant 0 : i32
    %c0_i32_0 = arith.constant 0 : i32
    %c0_i32_1 = arith.constant 0 : i32
    return %arg1, %c0_i32, %c0_i32_0 : i32, i32, i32
  }
  func.func @transform_4(%arg0: i32, %arg1: i32) -> (i32, i32, i32) {
    %c0_i32 = arith.constant 0 : i32
    %c0_i32_0 = arith.constant 0 : i32
    %c0_i32_1 = arith.constant 0 : i32
    return %arg1, %c0_i32, %c0_i32_0 : i32, i32, i32
  }
  func.func @transform_5(%arg0: i32, %arg1: i32) -> (i32, i32, i32) {
    %c0_i32 = arith.constant 0 : i32
    %c0_i32_0 = arith.constant 0 : i32
    %c0_i32_1 = arith.constant 0 : i32
    return %arg1, %c0_i32, %c0_i32_0 : i32, i32, i32
  }
  func.func @transform_6(%arg0: i32, %arg1: i32) -> (i32, i32, i32) {
    %c0_i32 = arith.constant 0 : i32
    %c0_i32_0 = arith.constant 0 : i32
    %c0_i32_1 = arith.constant 0 : i32
    return %arg1, %c0_i32, %c0_i32_0 : i32, i32, i32
  }
  func.func @transform_7(%arg0: i32, %arg1: i32) -> (i32, i32, i32) {
    %c0_i32 = arith.constant 0 : i32
    %c0_i32_0 = arith.constant 0 : i32
    %c0_i32_1 = arith.constant 0 : i32
    return %arg1, %c0_i32, %c0_i32_0 : i32, i32, i32
  }
  func.func @transform_8(%arg0: i32, %arg1: i32) -> (i32, i32, i32) {
    %c0_i32 = arith.constant 0 : i32
    %c0_i32_0 = arith.constant 0 : i32
    %c0_i32_1 = arith.constant 0 : i32
    return %arg1, %c0_i32, %c0_i32_0 : i32, i32, i32
  }
  func.func @transform_9(%arg0: i32, %arg1: i32) -> (i32, i32, i32) {
    %c0_i32 = arith.constant 0 : i32
    %c0_i32_0 = arith.constant 0 : i32
    %c0_i32_1 = arith.constant 0 : i32
    return %arg1, %c0_i32, %c0_i32_0 : i32, i32, i32
  }
  func.func @transform_10(%arg0: i32, %arg1: i32) -> (i32, i32, i32) {
    %c0_i32 = arith.constant 0 : i32
    %c0_i32_0 = arith.constant 0 : i32
    %c0_i32_1 = arith.constant 0 : i32
    return %arg1, %c0_i32, %c0_i32_0 : i32, i32, i32
  }
  func.func @transform_11(%arg0: i32, %arg1: i32) -> (i32, i32, i32) {
    %c0_i32 = arith.constant 0 : i32
    %c0_i32_0 = arith.constant 0 : i32
    %c0_i32_1 = arith.constant 0 : i32
    return %arg1, %c0_i32, %c0_i32_0 : i32, i32, i32
  }
  func.func @transform_12(%arg0: i32, %arg1: i32) -> (i32, i32, i32) {
    %c0_i32 = arith.constant 0 : i32
    %c0_i32_0 = arith.constant 0 : i32
    %c0_i32_1 = arith.constant 0 : i32
    return %arg1, %c0_i32, %c0_i32_0 : i32, i32, i32
  }
  func.func @transform_13(%arg0: i32, %arg1: i32) -> (i32, i32, i32) {
    %c0_i32 = arith.constant 0 : i32
    %c0_i32_0 = arith.constant 0 : i32
    %c0_i32_1 = arith.constant 0 : i32
    return %arg0, %c0_i32, %c0_i32_0 : i32, i32, i32
  }
}

</mosaic_0001>

<bundles_post_ra>
// kernel: tpu_custom_call.1
= control target key start
LH: loop header
LB: loop body
LE: loop exit
PB: predicated region body
PF: predicated region fallthrough
CT: control target
= control target key end

     0   :  { %s3342_s0 = inlined_call_operand.hbm [shape: f32[2,8,32], index: 0, kind: input, shape index: {}]   ;;  %s3343_s1 = inlined_call_operand.hbm [shape: f32[2,1,8], index: 1, kind: input, shape index: {}]   ;;  %s3344_s2 = inlined_call_operand.vmem [shape: bf16[2,32,96], index: 2, kind: input, shape index: {}]   ;;  %s3345_s3 = inlined_call_operand.vmem [shape: bf16[2,32,32], index: 3, kind: input, shape index: {}]   ;;  %s3346_s4 = inlined_call_operand.vmem [shape: f32[2,1,32], index: 4, kind: input, shape index: {}]   ;;  %s3347_s5 = inlined_call_operand.vmem [shape: f32[2,1,32], index: 5, kind: input, shape index: {}]   ;;  %s3348_s6 = inlined_call_operand.vmem [shape: f32[2,1,32], index: 6, kind: input, shape index: {}]   ;;  %s3349_s7 = inlined_call_operand.vmem [shape: f32[2,1,32], index: 7, kind: input, shape index: {}]   ;;  %s3350_s8 = inlined_call_operand.vmem [shape: f32[2,1,32], index: 8, kind: input, shape index: {}]   ;;  %s3351_s9 = inlined_call_operand.vmem [shape: bf16[2,32,64], index: 9, kind: input, shape index: {}]   ;;  %s3352_s10 = inlined_call_operand.vmem [shape: f32[2,1,64], index: 10, kind: input, shape index: {}]   ;;  %s3353_s11 = inlined_call_operand.vmem [shape: bf16[2,64,32], index: 11, kind: input, shape index: {}]   ;;  %s3354_s12 = inlined_call_operand.vmem [shape: f32[2,1,32], index: 12, kind: input, shape index: {}]   ;;  %s3355_s13 = inlined_call_operand.hbm [shape: f32[2,8,32], index: 13, kind: output, shape index: {}]  }
   0x1   :  { %3369 = sst [smem:[#allocation25_spill]] %s3342_s0 }
   0x2   :  { %3370 = sst [smem:[#allocation26_spill]] %s3343_s1 }
   0x3   :  { %3371 = sst [smem:[#allocation27_spill]] %s3344_s2 }
   0x4   :  { %3372 = sst [smem:[#allocation28_spill]] %s3345_s3 }
   0x5   :  { %3373 = sst [smem:[#allocation29_spill]] %s3349_s7 }
   0x6   :  { %3374 = sst [smem:[#allocation30_spill]] %s3353_s11 }
   0x7   :  { %3375 = sst [smem:[#allocation31_spill]] %s3355_s13 }
   0x8   :  { %18 = vsyncpa [#allocation4], 0 }
   0x9   :  { %20 = vsyncpa [#allocation4 + $0x1], 0 }
   0xa   :  { %21 = vsyncpa [#allocation7], 0 }
   0xb   :  { %23 = vsyncpa [#allocation7 + $0x1], 0 }
   0xc   :  { %24 = vsyncpa [#allocation5], 0 }
   0xd   :  { %26 = vsyncpa [#allocation5 + $0x1], 0  ;;  %s2868_s25 = smov 0   ;;  %s2870_s26 = smov 0  }
   0xe   :  { %s2872_s27 = smov 0   ;;  %s2874_s28 = smov 0  }
   0xf   :  { %s2876_s29 = smov 0   ;;  %s2878_s30 = smov 0  }
  0x10   :  { %s2880_s14 = smov 0   ;;  %s2882_s15 = smov 0  }
  0x11 LB: > { %3376 = sst [smem:[#allocation12_spill]] %s2746_s25  ;;  %s2303_s16 = sadd.s32 4294967295, %s2774_s15   ;;  %s2774_s15 = sphi %s2882_s15, %s32_s15   ;;  %s2770_s14 = sphi %s2880_s14, %s3421_s14   ;;  %s2766_s30 = sphi %s2878_s30, %s3420_s30   ;;  %s2762_s29 = sphi %s2876_s29, %s3419_s29   ;;  %s2758_s28 = sphi %s2874_s28, %s3418_s28   ;;  %s2754_s27 = sphi %s2872_s27, %s3417_s27   ;;  %s2750_s26 = sphi %s2870_s26, %s3416_s26   ;;  %s2746_s25 = sphi %s2868_s25, %s3415_s25  }
  0x12   : > { %3377 = sst [smem:[#allocation13_spill]] %s2750_s26  ;;  %s2304_s17 = sadd.s32 4294967294, %s2774_s15  }
  0x13   : > { %3378 = sst [smem:[#allocation14_spill]] %s2754_s27  ;;  %s41_s18 = sadd.s32 1, %s2766_s30 }
  0x14   : > { %3379 = sst [smem:[#allocation15_spill]] %s2762_s29  ;;  %s44_s19 = sadd.s32 1, %s2770_s14 }
  0x15   : > { %3380 = sst [smem:[#allocation16_spill]] %s2766_s30  ;;  %p42_p0 = scmp.ge.s32.totalorder %s41_s18, 2 }
  0x16   : > { %3381 = sst [smem:[#allocation17_spill]] %s2770_s14  ;;  %s51_s20 = sadd.s32 1, %s2754_s27 }
  0x17   : > { %3382 = sst [smem:[#allocation18_spill]] %s2774_s15  ;;  %p58_p1 = scmp.ne.s32.totalorder %s2754_s27, %s2750_s26 }
  0x18   : > { %p59_p2 = scmp.eq.s32.totalorder %s2774_s15, 0  ;;  %s3423_s18 = smov (%p42_p0, %s41_s18), 0 }
  0x19   : > { %3383 = sst [smem:[#allocation19_spill]] %s3423_s18  ;;  %s3425_s19 = smov (!%p42_p0, %s44_s19), %s2770_s14 }
  0x1a   : > { %p2919_p3 = por %p59_p2, %p58_p1  ;;  %p64_p4 = scmp.ne.s32.totalorder %s2750_s26, %s2746_s25 }
  0x1b   : > { %p46_p5 = scmp.ge.s32.totalorder %s3425_s19, 2  ;;  %p65_p6 = scmp.eq.s32.totalorder %s2303_s16, 0 }
  0x1c   : > { %p400_p7 = scmp.eq.s32.totalorder %s2303_s16, 3  ;;  %p406_p8 = scmp.eq.s32.totalorder %s2304_s17, 3 }
  0x1d   : > { %s3427_s19 = smov (%p46_p5, %s3425_s19), 0  ;;  %p2927_p9 = por %p65_p6, %p64_p4 }
  0x1e   : > { %3385 = sst [smem:[#allocation20_spill]] %s3427_s19  ;;  %p2931_p10 = por %p400_p7, %p58_p1 }
  0x1f   : > { %s48_s24 = ssub.s32 %s2770_s14, %s3427_s19  ;;  %p2937_p11 = por %p406_p8, %p64_p4 }
  0x20   : > { %s3387_s23 = scalar_select %p2931_p10, 1, 0 }
  0x21   : > { %s3389_s18 = scalar_select %p2937_p11, 1, 0 }
  0x22   : > { %3388 = sst [smem:[#allocation21_spill]] %s3387_s23  ;;  %p49_p12 = scmp.eq.s32.totalorder %s48_s24, 0 }
  0x23   : > { %3390 = sst [smem:[#allocation22_spill]] %s3389_s18  ;;  %p2503_p13 = scmp.lt.s32.totalorder %s2774_s15, 4 }
  0x24   : > { %s2943_s16 = sand.u32 1, %s2754_s27   ;;  %s2308_s25 = sshll.u32 %s2770_s14, 7 }
  0x25   : > { %s2946_s17 = scalar_select %p49_p12, %s2754_s27, %s51_s20  }
  0x26   : > { %s2307_s30 = sshll.u32 %s2943_s16, 3  ;;  %s3392_s0 = sld [smem:[#allocation25_spill]] }
  0x27   : > { %3391 = sst [smem:[#allocation23_spill]] %s2946_s17  ;;  %s430_s23 = scalar_lea.vmem [#allocation3], %s2307_s30 }
  0x28   : > { %s437_s19 = sshll.u32 %s430_s23, 4  ;;  %p2955_p0 = pnand %p2503_p13, %p2919_p3  ;;  %s438_s19 = int_to_ptr.vmem [resolvable:$true] %s437_s19 }
  0x29   : > { %p2310_p1 = scmp.ge.s32.totalorder %s2774_s15, 1  ;;  %p533_p2 = scmp.lt.s32.totalorder %s2774_s15, 5 }
  0x2a   : > { %s427_s20 = scalar_lea.sflag [#allocation4], %s2943_s16  ;;  %p2620_p4 = pneg %p2955_p0 }
  0x2b   : > { %s2631_s24 = scalar_lea.vmem %s438_s19, 128  ;;  %s2776_s13 = smov [#allocation3]  }
  0x2c   : > { %s435_s11 = scalar_lea.hbm %s3392_s0, %s2308_s25  ;;  %p2632_p5 = scmp.ne.s32.totalorder %s438_s19, %s2631_s24 }
  0x2d   : > { %s2636_s25 = sshll.u32 %s2776_s13, 4  ;;  %s2637_s25 = int_to_ptr.vmem [resolvable:$false] %s2636_s25 }
  0x2e   : > { %p2634_p6 = pnand %p2632_p5, %p2620_p4  ;;  %s2638_s29 = scalar_lea.vmem %s2637_s25, 256 }
  0x2f   : > { %p2639_p3 = scmp.lt.s32.totalorder %s438_s19, %s2637_s25  ;;  %p2640_p8 = scmp.lt.s32.totalorder %s2638_s29, %s2631_s24 }
  0x30   : > { %p2635_p7 = pneg %p2634_p6 }
  0x31   : > { %p2641_p12 = por %p2640_p8, %p2639_p3 }
  0x33   : > { %p2642_p13 = pnand %p2641_p12, %p2635_p7 }
  0x35   : > { %2645 = shalt.err (!%p2642_p13)
}
  0x36   : > { %2495 = dma.hbm_to_vmem [thread:$0]  (!%p2955_p0), %s435_s11, 128, %s438_s19, %s427_s20  }
  0x37   : > { %p2973_p5 = pnand %p2310_p1, %p533_p2  ;;  %s2309_s21 = sshll.u32 %s2770_s14, 4 }
  0x38   : > { %s447_s23 = scalar_lea.vmem [#allocation6], %s2943_s16  ;;  %s3395_s1 = sld [smem:[#allocation26_spill]] }
  0x39   : > { %s454_s24 = sshll.u32 %s447_s23, 4  ;;  %s445_s0 = scalar_lea.sflag [#allocation7], %s2943_s16  ;;  %s455_s24 = int_to_ptr.vmem [resolvable:$true] %s454_s24 }
  0x3a   : > { %s2659_s17 = scalar_lea.vmem %s455_s24, 16  ;;  %s2777_s11 = smov [#allocation6]  }
  0x3b   : > { %p2660_p6 = scmp.ne.s32.totalorder %s455_s24, %s2659_s17  ;;  %s2664_s19 = sshll.u32 %s2777_s11, 4  ;;  %s2665_s19 = int_to_ptr.vmem [resolvable:$false] %s2664_s19 }
  0x3c   : > { %s2666_s20 = scalar_lea.vmem %s2665_s19, 32  ;;  %p2667_p1 = scmp.lt.s32.totalorder %s455_s24, %s2665_s19 }
  0x3d   : > { %p2662_p7 = pnand %p2660_p6, %p2620_p4  ;;  %p2668_p2 = scmp.lt.s32.totalorder %s2666_s20, %s2659_s17 }
  0x3e   : > { %s452_s29 = scalar_lea.hbm %s3395_s1, %s2309_s21 }
  0x3f   : > { %p2663_p3 = pneg %p2662_p7  ;;  %p2669_p8 = por %p2668_p2, %p2667_p1 }
  0x41   : > { %p2670_p12 = pnand %p2669_p8, %p2663_p3 }
  0x43   : > { %2673 = shalt.err (!%p2670_p12)
}
  0x44   : > { %2498 = dma.hbm_to_vmem [thread:$0]  (!%p2955_p0), %s452_s29, 16, %s455_s24, %s445_s0  }
  0x45   : > { %537 = sbr.rel (%p2973_p5) target bundleno = 2580 (0xa14), region = 72 }
  0x4a   : > { %s2991_s16 = sand.u32 1, %s2750_s26  }
  0x4b   : > { %3396 = sst [smem:[#allocation24_spill]] %s2991_s16  ;;  %s2311_s21 = sshll.u32 %s2991_s16, 3 }
  0x4c   : > { %s540_s23 = scalar_lea.sflag [#allocation4], %s2991_s16  ;;  %s543_s13 = scalar_lea.vmem [#allocation3], %s2311_s21 }
  0x4d   : > { %2733 = dma.done.wait (%p2927_p9), %s540_s23, 128  }
  0x4e   : > { %2735 = vsyncadd (%p2927_p9), %s540_s23, 4294967168  ;;  %s549_s0 = scalar_lea.sflag [#allocation7], %s2991_s16 }
  0x4f   : > { %2737 = dma.done.wait (%p2927_p9), %s549_s0, 16  }
  0x50   : > { %2739 = vsyncadd (%p2927_p9), %s549_s0, 4294967280  ;;  %p639_p0 = scmp.lt.s32.totalorder %s2758_s28, 1  ;;  %s3397_s2 = sld [smem:[#allocation27_spill]] }
  0x51   : > { %s3398_s3 = sld [smem:[#allocation28_spill]]  ;;  %s3057_s22 = scalar_lea.vmem [#allocation8], %s2311_s21 }
  0x52   : > { %s3007_s17 = scalar_select %p639_p0, %s2758_s28, 1 }
  0x53   : > { %s3400_s25 = sld [smem:[#allocation30_spill]]  ;;  %p2321_p9 = scmp.ne.s32.totalorder %s2758_s28, 0 }
  0x54   : > { %s2368_s30 = sshll.u32 %s3007_s17, 4  ;;  %s663_s11 = scalar_lea.vmem %s3350_s8, %s3007_s17 }
  0x55   : > { %s3041_s23 = scalar_lea.vmem %s3351_s9, %s2368_s30  ;;  %s671_s18 = scalar_lea.vmem %s3352_s10, %s3007_s17 }
  0x56   : > { %s643_s19 = scalar_lea.vmem %s3397_s2, %s2368_s30  ;;  %s2371_s14 = sshll.u32 %s3007_s17, 5 }
  0x57   : > { %s3020_s0 = scalar_lea.vmem %s3398_s3, %s2368_s30  ;;  %s679_s15 = scalar_lea.vmem %s3354_s12, %s3007_s17 }
  0x58   : > { %684 = sbr.rel (%p2321_p9) target bundleno = 95 (0x5f), region = 84 }
  0x59   : > { %s3055_s7 = scalar_lea.vmem %s3400_s25, %s2371_s14 }
  0x5d   : > { %v685_v0 = vld [vmem:[%s543_s13] sm:$0xff]  ;;  %vm686_vm0 = vcmask 261120  }
  0x5e   : > { %687 = vst.msk [vmem:[#allocation2] sm:$0xff] %vm686_vm0, %v685_v0 }
  0x5f PF: > { %v2588_v1 = vld [vmem:[%s643_s19 + $0x8] sm:$0xff]   ;;  %v2778_v2 = vmov 0.0   ;;  %v2589_v3 = vld [vmem:[%s643_s19] sm:$0xff]   ;;  %vm2779_vm1 = vmmov 0   ;;  %vm706_vm2 = vcmask 261120   ;;  %s2780_s2 = smov 80   ;;  %v789_v12 = vlaneseq }
  0x60   : > { %2402 = vmatprep.subr.bf16.mxu0 %v2778_v2  ;;  %2410 = vmatprep.subr.bf16.mxu1 %v2778_v2  ;;  %s2781_s3 = smov 96   ;;  %s2782_s14 = smov 72   ;;  %v2787_v10 = vmov 1983009808   ;;  %v2788_v13 = vmov 1934713408  }
  0x61   : > { %2403 = vmatpush3.bf16.msra.mxu0 %v2588_v1  ;;  %2406 = vmatprep.mubr.msk.bf16.mxu0 %vm2779_vm1, %v2778_v2  ;;  %s2783_s21 = smov 88   ;;  %s2784_s13 = smov 112   ;;  %v787_v11 = vunpack.c.l.s4 %v2787_v10  ;;  %v851_v14 = vunpack.c.l.s4 %v2788_v13  ;;  %v3084_v16 = vshrl.u32 %v789_v12, 7  ;;  %vm1200_vm3 = vcmask 64512  }
  0x62   : > { %2404 = vmatprep.subr.bf16.mxu0 %v2778_v2  ;;  %2412 = vmatprep.mubr.msk.bf16.mxu1 %vm2779_vm1, %v2778_v2  ;;  %s2785_s30 = smov 120   ;;  %s2786_s19 = smov 104   ;;  %vm1456_vm6 = vcmask 1043456   ;;  %vm1787_vm7 = vcmask 130048   ;;  %vm1789_vm8 = vcmask 195584   ;;  %vm1997_vm9 = vcmask 523264  }
  0x63   : > { %v788_v15 = vunpack.c.0.s8 %v787_v11  ;;  %v852_v19 = vunpack.c.0.s8 %v851_v14  ;;  %s3401_s25 = sld [smem:[#allocation24_spill]]  ;;  %s2790_s20 = smov 56  }
  0x64   : > { %s2791_s1 = smov 64   ;;  %s2792_s26 = smov 48  }
  0x65   : > { %v3064_v4 = vld [vmem:[#allocation2] sm:$0xff]  ;;  %2405 = vmatpush3.bf16.msra.mxu0 %v2589_v3  ;;  %v3087_v20 = vsub.s32 %v788_v15, %v3084_v16  ;;  %v3090_v27 = vsub.s32 %v852_v19, %v3084_v16  ;;  %s2793_s27 = smov 40   ;;  %s2795_s16 = smov 8  }
  0x66   : > { %v689_v5 = vpack.c.bf16 %v3064_v4, %v3064_v4  ;;  %2416 = vmatprep.subr.bf16.mxu0 %v2778_v2  ;;  %s2796_s24 = smov 24   ;;  %p2363_p4 = scmp.ne.s32.totalorder %s2758_s28, 1 }
  0x68   : > { %2407 = vmatmul.mubr.msk.bf16.vlgmr.msra.gmra.mxu0 %vm706_vm2, %v689_v5 }
  0x69   : > { %2418 = vmatprep.mubr.msk.bf16.mxu0 %vm2779_vm1, %v2778_v2  ;;  %s3402_s29 = scalar_lea.vmem [#allocation6], %s3401_s25  ;;  %s3405_s25 = scalar_lea.vmem %s3348_s6, %s3007_s17 }
 0x128   : > { %v3075_v6 = vpop.f32.mrf.mxu0 }
 0x129   : > { %766 = vrot.lane.b32.xlu1 %v3075_v6, %s2780_s2  ;;  %760 = vrot.lane.b32.xlu0 %v3075_v6, %s2781_s3 }
 0x12a   : > { %v2408_v7 = vpop.f32.mrf.mxu0 }
 0x12c   : > { %v747_v8 = vpop.f32.mrf.mxu0 }
 0x12d   : > { %769 = vrot.lane.b32.xlu1 %v3075_v6, %s2782_s14  ;;  %763 = vrot.lane.b32.xlu0 %v3075_v6, %s2783_s21  ;;  %s3403_s14 = scalar_lea.vmem %s3346_s4, %s3007_s17 }
 0x12e   : > { %v2409_v9 = vpop.f32.mrf.mxu0 }
 0x131   : > { %754 = vrot.lane.b32.xlu1 %v3075_v6, %s2784_s13  ;;  %751 = vrot.lane.b32.xlu0 %v3075_v6, %s2785_s30  ;;  %s3404_s13 = scalar_lea.vmem %s3347_s5, %s3007_s17 }
 0x135   : > { %757 = vrot.lane.b32.xlu0 %v3075_v6, %s2786_s19 }
 0x19b   : > { %v767_v17 = vpop.permute.xlu1 %766  ;;  %v761_v18 = vpop.permute.xlu0 %760 }
 0x19c   : > { %v816_v21 = vcombine.low %v761_v18, %v767_v17  ;;  %v817_v22 = vcombine.high %v761_v18, %v767_v17 }
 0x19e   : > { %v824_v28 = vrot.slane %v816_v21, %v3087_v20  ;;  %v831_v29 = vrot.slane %v817_v22, %v3087_v20 }
 0x19f   : > { %v770_v23 = vpop.permute.xlu1 %769  ;;  %v764_v24 = vpop.permute.xlu0 %763 }
 0x1a0   : > { %v832_v25 = vcombine.low %v764_v24, %v770_v23  ;;  %v833_v26 = vcombine.high %v764_v24, %v770_v23 }
 0x1a2   : > { %v840_v30 = vrot.slane %v832_v25, %v3087_v20  ;;  %v847_v31 = vrot.slane %v833_v26, %v3087_v20 }
 0x1a3   : > { %v752_v32 = vpop.permute.xlu0 %751  ;;  %v755_v37 = vpop.permute.xlu1 %754 }
 0x1a4   : > { %v880_v33 = vcombine.low %v824_v28, %v840_v30  ;;  %v881_v34 = vcombine.high %v824_v28, %v840_v30  ;;  %v896_v35 = vcombine.low %v831_v29, %v847_v31  ;;  %v897_v36 = vcombine.high %v831_v29, %v847_v31 }
 0x1a5   : > { %v784_v42 = vcombine.low %v3075_v6, %v755_v37  ;;  %v785_v43 = vcombine.high %v3075_v6, %v755_v37 }
 0x1a6   : > { %v888_v38 = vrot.slane %v880_v33, %v3090_v27  ;;  %v895_v39 = vrot.slane %v881_v34, %v3090_v27  ;;  %v904_v40 = vrot.slane %v896_v35, %v3090_v27  ;;  %v911_v41 = vrot.slane %v897_v36, %v3090_v27 }
 0x1a7   : > { %v758_v44 = vpop.permute.xlu0 %757  ;;  %v792_v55 = vrot.slane %v784_v42, %v3087_v20  ;;  %v799_v56 = vrot.slane %v785_v43, %v3087_v20 }
 0x1a8   : > { %v2326_v45 = vcombine.low %v888_v38, %v895_v39  ;;  %v2328_v46 = vcombine.high %v888_v38, %v895_v39  ;;  %v2330_v47 = vcombine.low %v904_v40, %v911_v41  ;;  %v2332_v48 = vcombine.high %v904_v40, %v911_v41 }
 0x1a9   : > { %v800_v49 = vcombine.low %v752_v32, %v758_v44  ;;  %v801_v50 = vcombine.high %v752_v32, %v758_v44 }
 0x1aa   : > { %v1003_v51 = vrot.slane %v2326_v45, %v3087_v20  ;;  %v1019_v52 = vrot.slane %v2328_v46, %v3087_v20  ;;  %v1035_v53 = vrot.slane %v2330_v47, %v3087_v20  ;;  %v1051_v54 = vrot.slane %v2332_v48, %v3087_v20 }
 0x1ab   : > { %v808_v57 = vrot.slane %v800_v49, %v3087_v20  ;;  %v815_v58 = vrot.slane %v801_v50, %v3087_v20 }
 0x1ac   : > { %v1068_v59 = vcombine.low %v1003_v51, %v1019_v52  ;;  %v1100_v60 = vcombine.low %v1035_v53, %v1051_v54  ;;  %v1069_v5 = vcombine.high %v1003_v51, %v1019_v52  ;;  %v1101_v7 = vcombine.high %v1035_v53, %v1051_v54  ;;  %v1385_v53 = vld [vmem:[%s3402_s29] sm:$0x1] }
 0x1ad   : > { %v848_v61 = vcombine.low %v792_v55, %v808_v57  ;;  %v849_v62 = vcombine.high %v792_v55, %v808_v57  ;;  %v864_v63 = vcombine.low %v799_v56, %v815_v58  ;;  %v865_v0 = vcombine.high %v799_v56, %v815_v58 }
 0x1ae   : > { %v1076_v1 = vrot.slane %v1068_v59, %v3090_v27  ;;  %v1108_v3 = vrot.slane %v1100_v60, %v3090_v27  ;;  %v1083_v22 = vrot.slane %v1069_v5, %v3090_v27  ;;  %v1115_v23 = vrot.slane %v1101_v7, %v3090_v27 }
 0x1af   : > { %v856_v8 = vrot.slane %v848_v61, %v3090_v27  ;;  %v863_v9 = vrot.slane %v849_v62, %v3090_v27  ;;  %v872_v10 = vrot.slane %v864_v63, %v3090_v27  ;;  %v879_v11 = vrot.slane %v865_v0, %v3090_v27 }
 0x1b0   : > { %v1120_v12 = vcombine.low %v1076_v1, %v1108_v3  ;;  %v1121_v13 = vcombine.high %v1076_v1, %v1108_v3  ;;  %v1122_v33 = vcombine.low %v1083_v22, %v1115_v23  ;;  %v1123_v34 = vcombine.high %v1083_v22, %v1115_v23 }
 0x1b1   : > { %v2325_v14 = vcombine.low %v856_v8, %v863_v9  ;;  %v2327_v15 = vcombine.high %v856_v8, %v863_v9  ;;  %v2329_v17 = vcombine.low %v872_v10, %v879_v11  ;;  %v2331_v18 = vcombine.high %v872_v10, %v879_v11 }
 0x1b2   : > { %v1196_v19 = vpack.c.bf16 %v1120_v12, %v1120_v12  ;;  %v1197_v21 = vpack.c.bf16 %v1121_v13, %v1121_v13  ;;  %v1198_v41 = vpack.c.bf16 %v1122_v33, %v1122_v33  ;;  %v1199_v42 = vpack.c.bf16 %v1123_v34, %v1123_v34 }
 0x1b3   : > { %v996_v24 = vrot.slane %v2325_v14, %v3087_v20  ;;  %v1012_v25 = vrot.slane %v2327_v15, %v3087_v20  ;;  %v1028_v26 = vrot.slane %v2329_v17, %v3087_v20  ;;  %v1044_v28 = vrot.slane %v2331_v18, %v3087_v20 }
 0x1b4   : > { %v1205_v29 = vsel %vm1200_vm3, %v1196_v19, 0  ;;  %v1251_v30 = vsel %vm1200_vm3, %v1197_v21, 0  ;;  %v1297_v47 = vsel %vm1200_vm3, %v1198_v41, 0  ;;  %v1343_v48 = vsel %vm1200_vm3, %v1199_v42, 0 }
 0x1b5   : > { %2411 = vmatpush3.bf16.xpose.msra.mxu1 %v1205_v29  ;;  %2417 = vmatpush3.bf16.xpose.msra.mxu0 %v1251_v30  ;;  %v1052_v31 = vcombine.low %v996_v24, %v1012_v25  ;;  %v1084_v32 = vcombine.low %v1028_v26, %v1044_v28  ;;  %v1053_v36 = vcombine.high %v996_v24, %v1012_v25  ;;  %vm1386_vm4 = vcmp.eq.f32.partialorder %v1385_v53, 0.0 }
 0x1b6   : > { %2422 = vmatprep.subr.bf16.mxu1 %v2778_v2  ;;  %2428 = vmatprep.subr.bf16.mxu0 %v2778_v2  ;;  %v1085_v37 = vcombine.high %v1028_v26, %v1044_v28  ;;  %v1390_v54 = vsub.s32 0, %v3084_v16  ;;  %v2789_v55 = vmov 0  }
 0x1b7   : > { %v1060_v35 = vrot.slane %v1052_v31, %v3090_v27  ;;  %v1092_v38 = vrot.slane %v1084_v32, %v3090_v27  ;;  %v1067_v45 = vrot.slane %v1053_v36, %v3090_v27  ;;  %v1387_v56 = vsel %vm1386_vm4, 1, %v2789_v55 }
 0x1b8   : > { %v1099_v46 = vrot.slane %v1085_v37, %v3090_v27  ;;  %v1391_v57 = vrot.slane %v1387_v56, %v1390_v54 }
 0x1b9   : > { %v1116_v39 = vcombine.low %v1060_v35, %v1092_v38  ;;  %v1117_v40 = vcombine.high %v1060_v35, %v1092_v38 }
 0x1ba   : > { %v1118_v49 = vcombine.low %v1067_v45, %v1099_v46  ;;  %v1119_v50 = vcombine.high %v1067_v45, %v1099_v46  ;;  %vm1392_vm5 = vcmp.eq.s32.totalorder %v1391_v57, 1 }
 0x1bb   : > { %v1192_v43 = vpack.c.bf16 %v1116_v39, %v1116_v39  ;;  %v1193_v44 = vpack.c.bf16 %v1117_v40, %v1117_v40 }
 0x1bc   : > { %v1194_v51 = vpack.c.bf16 %v1118_v49, %v1118_v49  ;;  %v1195_v52 = vpack.c.bf16 %v1119_v50, %v1119_v50 }
 0x1bd   : > { %2413 = vmatmul.mubr.msk.bf16.vlgmr.msra.gmra.mxu1 %vm1200_vm3, %v1192_v43  ;;  %2419 = vmatmul.mubr.msk.bf16.vlgmr.msra.gmra.mxu0 %vm1200_vm3, %v1193_v44 }
 0x1be   : > { %2423 = vmatpush3.bf16.xpose.msra.mxu1 %v1297_v47  ;;  %2429 = vmatpush3.bf16.xpose.msra.mxu0 %v1343_v48 }
 0x1bf   : > { %2424 = vmatprep.mubr.msk.bf16.mxu1 %vm2779_vm1, %v2778_v2  ;;  %2430 = vmatprep.mubr.msk.bf16.mxu0 %vm2779_vm1, %v2778_v2 }
 0x1c0   : > { %2434 = vmatprep.subr.bf16.mxu1 %v2778_v2  ;;  %2440 = vmatprep.subr.bf16.mxu0 %v2778_v2 }
 0x1c5   : > { %2425 = vmatmul.mubr.msk.bf16.vlgmr.msra.gmra.mxu1 %vm1200_vm3, %v1194_v51  ;;  %2431 = vmatmul.mubr.msk.bf16.vlgmr.msra.gmra.mxu0 %vm1200_vm3, %v1195_v52 }
 0x1c6   : > { %2436 = vmatprep.mubr.msk.bf16.mxu1 %vm2779_vm1, %v2778_v2  ;;  %2442 = vmatprep.mubr.msk.bf16.mxu0 %vm2779_vm1, %v2778_v2 }
 0x27d   : > { %v1241_v58 = vpop.f32.mrf.mxu1  ;;  %v1287_v59 = vpop.f32.mrf.mxu0 }
 0x27e   : > { %v1393_v60 = vsel %vm1392_vm5, -1e+20, %v1241_v58  ;;  %v1394_v61 = vsel %vm1392_vm5, -1e+20, %v1287_v59 }
 0x27f   : > { %v1397_v62 = vmul.f32 0.17677669, %v1393_v60  ;;  %v1398_v63 = vmul.f32 0.17677669, %v1394_v61  ;;  %v2414_v0 = vpop.f32.mrf.mxu1  ;;  %v2420_v1 = vpop.f32.mrf.mxu0 }
 0x281   : > { %v1244_v3 = vpop.f32.mrf.mxu1  ;;  %v1290_v5 = vpop.f32.mrf.mxu0  ;;  %v1401_v7 = vsel %vm1200_vm3, %v1397_v62, -inf  ;;  %v1404_v16 = vsel %vm1200_vm3, %v1398_v63, -inf }
 0x282   : > { %1402 = vmax.xlane.f32.xlu1 %v1401_v7  ;;  %1405 = vmax.xlane.f32.xlu0 %v1404_v16 }
 0x283   : > { %v2415_v8 = vpop.f32.mrf.mxu1  ;;  %v2421_v9 = vpop.f32.mrf.mxu0 }
 0x285   : > { %v1333_v10 = vpop.f32.mrf.mxu1  ;;  %v1379_v11 = vpop.f32.mrf.mxu0 }
 0x286   : > { %v1395_v12 = vsel %vm1392_vm5, -1e+20, %v1333_v10  ;;  %v1396_v13 = vsel %vm1392_vm5, -1e+20, %v1379_v11 }
 0x287   : > { %v1399_v14 = vmul.f32 0.17677669, %v1395_v12  ;;  %v1400_v15 = vmul.f32 0.17677669, %v1396_v13  ;;  %v2426_v17 = vpop.f32.mrf.mxu1  ;;  %v2432_v18 = vpop.f32.mrf.mxu0 }
 0x289   : > { %v1336_v19 = vpop.f32.mrf.mxu1  ;;  %v1382_v21 = vpop.f32.mrf.mxu0  ;;  %v1407_v22 = vsel %vm1200_vm3, %v1399_v14, -inf  ;;  %v1410_v23 = vsel %vm1200_vm3, %v1400_v15, -inf }
 0x28a   : > { %1408 = vmax.xlane.f32.xlu0 %v1407_v22  ;;  %1411 = vmax.xlane.f32.xlu1 %v1410_v23 }
 0x28b   : > { %v2427_v24 = vpop.f32.mrf.mxu1  ;;  %v2433_v25 = vpop.f32.mrf.mxu0 }
 0x29b   : > { %775 = vrot.lane.b32.xlu1 %v3075_v6, %s2790_s20 }
 0x2a0   : > { %772 = vrot.lane.b32.xlu0 %v3075_v6, %s2791_s1 }
 0x30b   : > { %v1403_v26 = vpop.xlane.xlu1 %1402  ;;  %v1406_v28 = vpop.xlane.xlu0 %1405 }
 0x30c   : > { %v1413_v29 = vsub.f32 %v1397_v62, %v1403_v26  ;;  %v1414_v30 = vsub.f32 %v1398_v63, %v1406_v28 }
 0x30e   : > { %v1417_v31 = vmul.f32 1.442695, %v1413_v29  ;;  %v1419_v32 = vmul.f32 1.442695, %v1414_v30 }
 0x310   : > { %2598 = vpow2.f32 %v1417_v31 }
 0x311   : > { %2600 = vpow2.f32 %v1419_v32 }
 0x313   : > { %v1412_v37 = vpop.xlane.xlu1 %1411  ;;  %v1409_v38 = vpop.xlane.xlu0 %1408 }
 0x314   : > { %v1416_v39 = vsub.f32 %v1400_v15, %v1412_v37  ;;  %v1415_v40 = vsub.f32 %v1399_v14, %v1409_v38 }
 0x316   : > { %v1423_v41 = vmul.f32 1.442695, %v1416_v39  ;;  %v1421_v42 = vmul.f32 1.442695, %v1415_v40 }
 0x317   : > { %v776_v47 = vpop.permute.xlu1 %775 }
 0x318   : > { %2602 = vpow2.f32 %v1423_v41 }
 0x319   : > { %2604 = vpow2.f32 %v1421_v42 }
 0x31d   : > { %v3159_v33 = vpop.eup %2598 }
 0x31e   : > { %v3161_v34 = vpop.eup %2600  ;;  %v1425_v35 = vsel %vm1200_vm3, %v3159_v33, 0.0 }
 0x31f   : > { %1426 = vadd.xlane.f32.xlu0 %v1425_v35  ;;  %v1428_v36 = vsel %vm1200_vm3, %v3161_v34, 0.0 }
 0x320   : > { %1429 = vadd.xlane.f32.xlu1 %v1428_v36 }
 0x325   : > { %v3169_v43 = vpop.eup %2602 }
 0x326   : > { %v3171_v44 = vpop.eup %2604  ;;  %v1434_v45 = vsel %vm1200_vm3, %v3169_v43, 0.0 }
 0x327   : > { %v1431_v46 = vsel %vm1200_vm3, %v3171_v44, 0.0 }
 0x331   : > { %778 = vrot.lane.b32.xlu1 %v3075_v6, %s2792_s26 }
 0x335   : > { %781 = vrot.lane.b32.xlu0 %v3075_v6, %s2793_s27  ;;  %v773_v6 = vpop.permute.xlu0 %772 }
 0x354   : > { %1435 = vadd.xlane.f32.xlu0 %v1434_v45 }
 0x355   : > { %1432 = vadd.xlane.f32.xlu1 %v1431_v46 }
 0x3a8   : > { %v1427_v48 = vpop.xlane.xlu0 %1426 }
 0x3a9   : > { %v1430_v49 = vpop.xlane.xlu1 %1429  ;;  %2606 = vrcp.f32 %v1427_v48 }
 0x3aa   : > { %2608 = vrcp.f32 %v1430_v49 }
 0x3ac   : > { %v782_v50 = vpop.permute.xlu0 %781 }
 0x3ad   : > { %v936_v51 = vcombine.low %v776_v47, %v782_v50  ;;  %v937_v52 = vcombine.high %v776_v47, %v782_v50  ;;  %v779_v53 = vpop.permute.xlu1 %778 }
 0x3ae   : > { %v920_v54 = vcombine.low %v773_v6, %v779_v53  ;;  %v921_v55 = vcombine.high %v773_v6, %v779_v53 }
 0x3af   : > { %v944_v56 = vrot.slane %v936_v51, %v3087_v20  ;;  %v951_v57 = vrot.slane %v937_v52, %v3087_v20 }
 0x3b0   : > { %v928_v58 = vrot.slane %v920_v54, %v3087_v20  ;;  %v935_v59 = vrot.slane %v921_v55, %v3087_v20 }
 0x3b2   : > { %v952_v60 = vcombine.low %v928_v58, %v944_v56  ;;  %v953_v61 = vcombine.high %v928_v58, %v944_v56  ;;  %v968_v62 = vcombine.low %v935_v59, %v951_v57  ;;  %v969_v63 = vcombine.high %v935_v59, %v951_v57 }
 0x3b4   : > { %v960_v0 = vrot.slane %v952_v60, %v3090_v27  ;;  %v967_v1 = vrot.slane %v953_v61, %v3090_v27  ;;  %v976_v3 = vrot.slane %v968_v62, %v3090_v27  ;;  %v983_v5 = vrot.slane %v969_v63, %v3090_v27 }
 0x3b6   : > { %v1124_v7 = vcombine.low %v960_v0, %v967_v1  ;;  %v2333_v16 = vcombine.high %v960_v0, %v967_v1  ;;  %v1140_v8 = vcombine.low %v976_v3, %v983_v5  ;;  %v2334_v9 = vcombine.high %v976_v3, %v983_v5  ;;  %v2607_v19 = vpop.eup %2606 }
 0x3b7   : > { %v2609_v25 = vpop.eup %2608  ;;  %v1441_v35 = vmul.f32 %v2607_v19, %v3159_v33 }
 0x3b8   : > { %v1131_v10 = vrot.slane %v1124_v7, %v3087_v20  ;;  %v1139_v11 = vrot.slane %v2333_v16, %v3087_v20  ;;  %v1147_v12 = vrot.slane %v1140_v8, %v3087_v20  ;;  %v1155_v13 = vrot.slane %v2334_v9, %v3087_v20 }
 0x3b9   : > { %v1442_v36 = vmul.f32 %v2609_v25, %v3161_v34  ;;  %v1445_v41 = vpack.c.bf16 %v1441_v35, %v1441_v35 }
 0x3ba   : > { %v1156_v14 = vcombine.low %v1131_v10, %v1139_v11  ;;  %v1172_v15 = vcombine.low %v1147_v12, %v1155_v13  ;;  %v1157_v17 = vcombine.high %v1131_v10, %v1139_v11  ;;  %v1173_v18 = vcombine.high %v1147_v12, %v1155_v13 }
 0x3bb   : > { %v1446_v42 = vpack.c.bf16 %v1442_v36, %v1442_v36 }
 0x3bc   : > { %v1164_v21 = vrot.slane %v1156_v14, %v3090_v27  ;;  %v1180_v22 = vrot.slane %v1172_v15, %v3090_v27  ;;  %v1171_v23 = vrot.slane %v1157_v17, %v3090_v27  ;;  %v1187_v24 = vrot.slane %v1173_v18, %v3090_v27  ;;  %v2590_v15 = vld [vmem:[%s3020_s0 + $0x8] sm:$0xff]  }
 0x3be   : > { %v1188_v26 = vcombine.low %v1164_v21, %v1180_v22  ;;  %v1189_v28 = vcombine.high %v1164_v21, %v1180_v22  ;;  %v1190_v29 = vcombine.low %v1171_v23, %v1187_v24  ;;  %v1191_v30 = vcombine.high %v1171_v23, %v1187_v24 }
 0x3c0   : > { %v1449_v31 = vpack.c.bf16 %v1188_v26, %v1188_v26  ;;  %v1450_v32 = vpack.c.bf16 %v1189_v28, %v1189_v28  ;;  %v1451_v39 = vpack.c.bf16 %v1190_v29, %v1190_v29  ;;  %v1452_v40 = vpack.c.bf16 %v1191_v30, %v1191_v30  ;;  %v2591_v28 = vld [vmem:[%s3020_s0] sm:$0xff]   ;;  %s2794_s0 = smov 16  }
 0x3c2   : > { %v1458_v37 = vsel %vm1456_vm6, %v1449_v31, 0  ;;  %v1504_v38 = vsel %vm1456_vm6, %v1450_v32, 0  ;;  %v1550_v33 = vsel %vm1456_vm6, %v1451_v39, 0  ;;  %v1596_v34 = vsel %vm1456_vm6, %v1452_v40, 0 }
 0x3c3   : > { %2435 = vmatpush3.bf16.msra.mxu1 %v1458_v37  ;;  %2441 = vmatpush3.bf16.msra.mxu0 %v1504_v38 }
 0x3c4   : > { %2446 = vmatprep.subr.bf16.mxu1 %v2778_v2  ;;  %2452 = vmatprep.subr.bf16.mxu0 %v2778_v2 }
 0x3c6   : > { %2437 = vmatmul.mubr.msk.bf16.vlgmr.msra.gmra.mxu1 %vm1200_vm3, %v1445_v41  ;;  %2443 = vmatmul.mubr.msk.bf16.vlgmr.msra.gmra.mxu0 %vm1200_vm3, %v1446_v42 }
 0x3c7   : > { %2447 = vmatpush3.bf16.msra.mxu1 %v1550_v33  ;;  %2453 = vmatpush3.bf16.msra.mxu0 %v1596_v34 }
 0x3c8   : > { %2448 = vmatprep.mubr.msk.bf16.mxu1 %vm2779_vm1, %v2778_v2  ;;  %2454 = vmatprep.mubr.msk.bf16.mxu0 %vm2779_vm1, %v2778_v2 }
 0x3c9   : > { %2458 = vmatprep.subr.bf16.mxu1 %v2778_v2  ;;  %2466 = vmatprep.subr.bf16.mxu0 %v2778_v2 }
 0x3dd   : > { %v1436_v45 = vpop.xlane.xlu0 %1435 }
 0x3de   : > { %2610 = vrcp.f32 %v1436_v45  ;;  %v1433_v46 = vpop.xlane.xlu1 %1432 }
 0x3df   : > { %2612 = vrcp.f32 %v1433_v46 }
 0x3eb   : > { %v2611_v6 = vpop.eup %2610 }
 0x3ec   : > { %v2613_v47 = vpop.eup %2612  ;;  %v1444_v48 = vmul.f32 %v2611_v6, %v3169_v43 }
 0x3ed   : > { %v1443_v49 = vmul.f32 %v2613_v47, %v3171_v44 }
 0x3ee   : > { %v1448_v50 = vpack.c.bf16 %v1444_v48, %v1444_v48 }
 0x3ef   : > { %v1447_v51 = vpack.c.bf16 %v1443_v49, %v1443_v49 }
 0x3f0   : > { %2455 = vmatmul.mubr.msk.bf16.vlgmr.msra.gmra.mxu0 %vm1200_vm3, %v1448_v50 }
 0x3f1   : > { %2449 = vmatmul.mubr.msk.bf16.vlgmr.msra.gmra.mxu1 %vm1200_vm3, %v1447_v51  ;;  %2470 = vmatprep.mubr.msk.bf16.mxu0 %vm2779_vm1, %v2778_v2  ;;  %v2345_v51 = vld [vmem:[%s3403_s14] ss:$0 sm:$0xff] }
 0x3f2   : > { %2462 = vmatprep.mubr.msk.bf16.mxu1 %vm2779_vm1, %v2778_v2  ;;  %2459 = vmatpush3.bf16.msra.mxu1 %v2590_v15  ;;  %v2351_v15 = vld [vmem:[%s671_s18] ss:$0 sm:$0xff]  ;;  %s3406_s18 = sld [smem:[#allocation29_spill]] }
 0x3f3   : > { %2460 = vmatprep.subr.bf16.mxu1 %v2778_v2 }
 0x3f6   : > { %2461 = vmatpush3.bf16.msra.mxu1 %v2591_v28 }
 0x3f7   : > { %2474 = vmatprep.subr.bf16.mxu1 %v2778_v2 }
 0x3f8   : > { %s3407_s27 = scalar_lea.vmem %s3406_s18, %s3007_s17 }
 0x486   : > { %v1494_v52 = vpop.f32.mrf.mxu1  ;;  %v1540_v53 = vpop.f32.mrf.mxu0 }
 0x488   : > { %v2438_v54 = vpop.f32.mrf.mxu1  ;;  %v2444_v55 = vpop.f32.mrf.mxu0 }
 0x48a   : > { %v1497_v56 = vpop.f32.mrf.mxu1  ;;  %v1543_v43 = vpop.f32.mrf.mxu0 }
 0x48c   : > { %v2439_v57 = vpop.f32.mrf.mxu1  ;;  %v2445_v44 = vpop.f32.mrf.mxu0 }
 0x4b0   : > { %v1632_v58 = vpop.f32.mrf.mxu0 }
 0x4b1   : > { %v1586_v59 = vpop.f32.mrf.mxu1  ;;  %v1654_v60 = vcombine.low %v1540_v53, %v1632_v58  ;;  %v1655_v61 = vcombine.high %v1540_v53, %v1632_v58 }
 0x4b2   : > { %v1638_v62 = vcombine.low %v1494_v52, %v1586_v59  ;;  %v1639_v63 = vcombine.high %v1494_v52, %v1586_v59  ;;  %v2456_v0 = vpop.f32.mrf.mxu0 }
 0x4b3   : > { %v1662_v1 = vrot.slane %v1654_v60, %v3087_v20  ;;  %v1669_v3 = vrot.slane %v1655_v61, %v3087_v20  ;;  %v2450_v5 = vpop.f32.mrf.mxu1  ;;  %v2595_v0 = vld [vmem:[%s3055_s7 + $0x10] sm:$0xff]  }
 0x4b4   : > { %v1646_v7 = vrot.slane %v1638_v62, %v3087_v20  ;;  %v1653_v16 = vrot.slane %v1639_v63, %v3087_v20  ;;  %v1635_v8 = vpop.f32.mrf.mxu0  ;;  %v2592_v62 = vld [vmem:[%s3041_s23 + $0x8] sm:$0xff]   ;;  %v2593_v63 = vld [vmem:[%s3041_s23] sm:$0xff]  }
 0x4b5   : > { %v1589_v9 = vpop.f32.mrf.mxu1  ;;  %2467 = vmatpush3.bf16.msra.mxu0 %v2592_v62 }
 0x4b6   : > { %v1670_v10 = vcombine.low %v1646_v7, %v1662_v1  ;;  %v1671_v11 = vcombine.high %v1646_v7, %v1662_v1  ;;  %v1686_v12 = vcombine.low %v1653_v16, %v1669_v3  ;;  %v1687_v13 = vcombine.high %v1653_v16, %v1669_v3  ;;  %v2457_v14 = vpop.f32.mrf.mxu0  ;;  %2468 = vmatprep.subr.bf16.mxu0 %v2778_v2  ;;  %v2349_v16 = vld [vmem:[%s3404_s13] ss:$0 sm:$0xff] }
 0x4b7   : > { %v2451_v17 = vpop.f32.mrf.mxu1  ;;  %v2350_v9 = vld [vmem:[%s3405_s25] ss:$0 sm:$0xff] }
 0x4b8   : > { %v1678_v18 = vrot.slane %v1670_v10, %v3090_v27  ;;  %v1685_v19 = vrot.slane %v1671_v11, %v3090_v27  ;;  %v1694_v21 = vrot.slane %v1686_v12, %v3090_v27  ;;  %v1701_v22 = vrot.slane %v1687_v13, %v3090_v27  ;;  %v2596_v13 = vld [vmem:[%s3055_s7 + $0x8] sm:$0xff]   ;;  %v2597_v14 = vld [vmem:[%s3055_s7] sm:$0xff]  }
 0x4b9   : > { %2469 = vmatpush3.bf16.msra.mxu0 %v2593_v63 }
 0x4ba   : > { %v1706_v23 = vcombine.low %v1678_v18, %v1685_v19  ;;  %v2343_v24 = vcombine.high %v1678_v18, %v1685_v19  ;;  %v1722_v25 = vcombine.low %v1694_v21, %v1701_v22  ;;  %v2344_v26 = vcombine.high %v1694_v21, %v1701_v22 }
 0x4bc   : > { %v1713_v29 = vrot.slane %v1706_v23, %v3087_v20  ;;  %v1721_v30 = vrot.slane %v2343_v24, %v3087_v20  ;;  %v1729_v31 = vrot.slane %v1722_v25, %v3087_v20  ;;  %v1737_v32 = vrot.slane %v2344_v26, %v3087_v20 }
 0x4be   : > { %v1739_v35 = vcombine.high %v1713_v29, %v1721_v30  ;;  %v1755_v36 = vcombine.high %v1729_v31, %v1737_v32  ;;  %v1738_v37 = vcombine.low %v1713_v29, %v1721_v30  ;;  %v1754_v38 = vcombine.low %v1729_v31, %v1737_v32 }
 0x4c0   : > { %v1753_v39 = vrot.slane %v1739_v35, %v3090_v27  ;;  %v1769_v40 = vrot.slane %v1755_v36, %v3090_v27  ;;  %v1746_v41 = vrot.slane %v1738_v37, %v3090_v27  ;;  %v1762_v42 = vrot.slane %v1754_v38, %v3090_v27 }
 0x4c2   : > { %v1772_v33 = vcombine.low %v1753_v39, %v1769_v40  ;;  %v1771_v34 = vcombine.high %v1746_v41, %v1762_v42  ;;  %v1770_v45 = vcombine.low %v1746_v41, %v1762_v42  ;;  %v1773_v20 = vcombine.high %v1753_v39, %v1769_v40 }
 0x4c4   : > { %1779 = vrot.lane.b32.xlu1 %v1772_v33, %s2794_s0  ;;  %1775 = vrot.lane.b32.xlu0 %v1771_v34, %s2795_s16  ;;  %v2361_v34 = vld [vmem:[%s3407_s27] ss:$0 sm:$0xff] }
 0x4c8   : > { %1783 = vrot.lane.b32.xlu1 %v1773_v20, %s2796_s24  ;;  %v2362_v20 = vld [vmem:[%s663_s11] ss:$0 sm:$0xff] }
 0x536   : > { %v1780_v46 = vpop.permute.xlu1 %1779  ;;  %v1776_v6 = vpop.permute.xlu0 %1775 }
 0x537   : > { %v1786_v47 = vsel %vm1200_vm3, %v1770_v45, %v1776_v6 }
 0x538   : > { %v1788_v49 = vsel %vm1787_vm7, %v1786_v47, %v1780_v46 }
 0x53a   : > { %v1784_v48 = vpop.permute.xlu1 %1783 }
 0x53b   : > { %v1790_v27 = vsel %vm1789_vm8, %v1788_v49, %v1784_v48 }
 0x53c   : > { %v1791_v50 = vpack.c.bf16 %v1790_v27, %v1790_v27 }
 0x53e   : > { %2463 = vmatmul.mubr.msk.bf16.vlgmr.msra.gmra.mxu1 %vm706_vm2, %v1791_v50 }
 0x53f   : > { %2482 = vmatprep.mubr.msk.bf16.mxu1 %vm2779_vm1, %v2778_v2 }
 0x5fe   : > { %v1852_v52 = vpop.f32.mrf.mxu1 }
 0x5ff   : > { %v1853_v53 = vadd.f32 %v2345_v51, %v1852_v52 }
 0x600   : > { %v2464_v54 = vpop.f32.mrf.mxu1 }
 0x601   : > { %v1858_v55 = vadd.f32 %v1853_v53, %v3064_v4  ;;  %v2594_v4 = vld [vmem:[%s3055_s7 + $0x18] sm:$0xff]  }
 0x602   : > { %v1855_v56 = vpop.f32.mrf.mxu1  ;;  %2475 = vmatpush3.bf16.msra.mxu1 %v2594_v4 }
 0x603   : > { %v1861_v43 = vsel %vm706_vm2, %v1858_v55, 0.0  ;;  %2476 = vmatprep.subr.bf16.mxu1 %v2778_v2 }
 0x604   : > { %1862 = vadd.xlane.f32.xlu0 %v1861_v43  ;;  %v2465_v57 = vpop.f32.mrf.mxu1 }
 0x606   : > { %2477 = vmatpush3.bf16.msra.mxu1 %v2595_v0 }
 0x607   : > { %2478 = vmatprep.subr.bf16.mxu1 %v2778_v2 }
 0x60a   : > { %2479 = vmatpush3.bf16.msra.mxu1 %v2596_v13 }
 0x60b   : > { %2480 = vmatprep.subr.bf16.mxu1 %v2778_v2  ;;  %v2355_v2 = vld [vmem:[%s679_s15] ss:$0 sm:$0xff] }
 0x60e   : > { %2481 = vmatpush3.bf16.msra.mxu1 %v2597_v14 }
 0x68d   : > { %v1863_v44 = vpop.xlane.xlu0 %1862 }
 0x68e   : > { %v1865_v58 = vmul.f32 0.03125, %v1863_v44 }
 0x690   : > { %v1866_v59 = vsub.f32 %v1858_v55, %v1865_v58 }
 0x692   : > { %v1867_v60 = vmul.f32 %v1866_v59, %v1866_v59 }
 0x694   : > { %v1868_v61 = vsel %vm706_vm2, %v1867_v60, 0.0 }
 0x695   : > { %1869 = vadd.xlane.f32.xlu1 %v1868_v61 }
 0x71e   : > { %v1870_v1 = vpop.xlane.xlu1 %1869 }
 0x71f   : > { %v1871_v3 = vmul.f32 0.03125, %v1870_v1 }
 0x721   : > { %v1872_v5 = vadd.f32 1e-05, %v1871_v3 }
 0x723   : > { %2614 = vrsqrt.f32 %v1872_v5 }
 0x730   : > { %v2615_v7 = vpop.eup %2614 }
 0x731   : > { %v1874_v8 = vmul.f32 %v2615_v7, %v1866_v59 }
 0x733   : > { %v1881_v10 = vmul.f32 %v2349_v16, %v1874_v8 }
 0x735   : > { %v1888_v11 = vadd.f32 %v2350_v9, %v1881_v10 }
 0x737   : > { %v1889_v12 = vpack.c.bf16 %v1888_v11, %v1888_v11 }
 0x739   : > { %2471 = vmatmul.mubr.msk.bf16.vlgmr.msra.gmra.mxu0 %vm706_vm2, %v1889_v12 }
 0x7f9   : > { %v1950_v17 = vpop.f32.mrf.mxu0 }
 0x7fa   : > { %v1951_v18 = vadd.f32 %v2351_v15, %v1950_v17 }
 0x7fb   : > { %v2472_v19 = vpop.f32.mrf.mxu0 }
 0x7fc   : > { %v1956_v21 = vmax.f32 %v1951_v18, 0.0 }
 0x7fd   : > { %v1953_v22 = vpop.f32.mrf.mxu0 }
 0x7fe   : > { %v1957_v23 = vpack.c.bf16 %v1956_v21, %v1956_v21 }
 0x7ff   : > { %v2473_v24 = vpop.f32.mrf.mxu0 }
 0x800   : > { %2483 = vmatmul.mubr.msk.bf16.vlgmr.msra.gmra.mxu1 %vm1997_vm9, %v1957_v23 }
 0x8c0   : > { %v2035_v25 = vpop.f32.mrf.mxu1 }
 0x8c1   : > { %v2036_v26 = vadd.f32 %v2355_v2, %v2035_v25 }
 0x8c2   : > { %v2484_v28 = vpop.f32.mrf.mxu1 }
 0x8c3   : > { %v2041_v29 = vadd.f32 %v2036_v26, %v1888_v11 }
 0x8c4   : > { %v2038_v30 = vpop.f32.mrf.mxu1 }
 0x8c5   : > { %v2044_v31 = vsel %vm706_vm2, %v2041_v29, 0.0 }
 0x8c6   : > { %2045 = vadd.xlane.f32.xlu0 %v2044_v31  ;;  %v2485_v32 = vpop.f32.mrf.mxu1 }
 0x94f   : > { %v2046_v35 = vpop.xlane.xlu0 %2045 }
 0x950   : > { %v2047_v36 = vmul.f32 0.03125, %v2046_v35 }
 0x952   : > { %v2048_v37 = vsub.f32 %v2041_v29, %v2047_v36 }
 0x954   : > { %v2049_v38 = vmul.f32 %v2048_v37, %v2048_v37 }
 0x956   : > { %v2050_v39 = vsel %vm706_vm2, %v2049_v38, 0.0 }
 0x957   : > { %2051 = vadd.xlane.f32.xlu0 %v2050_v39 }
 0x9e0   : > { %v2052_v40 = vpop.xlane.xlu0 %2051 }
 0x9e1   : > { %v2053_v41 = vmul.f32 0.03125, %v2052_v40 }
 0x9e3   : > { %v2054_v42 = vadd.f32 1e-05, %v2053_v41 }
 0x9e5   : > { %2616 = vrsqrt.f32 %v2054_v42 }
 0x9f2   : > { %v2617_v33 = vpop.eup %2616 }
 0x9f3   : > { %v2056_v45 = vmul.f32 %v2617_v33, %v2048_v37 }
 0x9f5   : > { %v2063_v46 = vmul.f32 %v2361_v34, %v2056_v45  ;;  %2075 = sbr.rel (%p2363_p4) target bundleno = 2555 (0x9fb), region = 88 }
 0x9f7   : > { %v2070_v6 = vadd.f32 %v2362_v20, %v2063_v46 }
 0x9f9   : > { %2071 = vst.msk [vmem:[#allocation2] sm:$0xff] %vm706_vm2, %v2070_v6 }
 0x9fa   : > { %2076 = vst.msk [vmem:[%s3057_s22] sm:$0xff] %vm706_vm2, %v2070_v6 }
 0x9fb PF: > { %s3408_s24 = sld [smem:[#allocation15_spill]]  ;;  %s2091_s13 = sshll.u32 %s3057_s22, 4  ;;  %s2092_s13 = int_to_ptr.vmem [resolvable:$true] %s2091_s13 }
 0x9fc   : > { %s3409_s2 = sld [smem:[#allocation24_spill]]  ;;  %s2674_s19 = scalar_lea.vmem %s2092_s13, 128 }
 0x9fd   : > { %s3411_s17 = sld [smem:[#allocation31_spill]]  ;;  %p2675_p13 = scmp.ne.s32.totalorder %s2092_s13, %s2674_s19 }
 0x9fe   : > { %s2797_s28 = smov [#allocation8]  }
 0x9ff   : > { %p2676_p5 = pnand %p2675_p13, %p2931_p10  ;;  %s2678_s25 = sshll.u32 %s2797_s28, 4  ;;  %s2679_s25 = int_to_ptr.vmem [resolvable:$false] %s2678_s25 }
 0xa00   : > { %s2680_s29 = scalar_lea.vmem %s2679_s25, 256  ;;  %p2681_p7 = scmp.lt.s32.totalorder %s2092_s13, %s2679_s25 }
 0xa01   : > { %s2365_s14 = sshll.u32 %s3408_s24, 7  ;;  %p2677_p6 = pneg %p2676_p5 }
 0xa02   : > { %s2078_s30 = scalar_lea.sflag [#allocation5], %s3409_s2  ;;  %p2682_p3 = scmp.lt.s32.totalorder %s2680_s29, %s2674_s19 }
 0xa03   : > { %s2089_s11 = scalar_lea.hbm %s3411_s17, %s2365_s14 }
 0xa04   : > { %p2683_p1 = por %p2682_p3, %p2681_p7 }
 0xa06   : > { %p2684_p2 = pnand %p2683_p1, %p2677_p6 }
 0xa08   : > { %2687 = shalt.err (!%p2684_p2)
}
 0xa09   : > { %s2688_s20 = scalar_lea.hbm %s2089_s11, 128  ;;  %s2692_s26 = scalar_lea.hbm %s3411_s17, 256 }
 0xa0a   : > { %p2689_p8 = scmp.ne.s32.totalorder %s2089_s11, %s2688_s20  ;;  %p2693_p9 = scmp.lt.s32.totalorder %s2089_s11, %s3411_s17 }
 0xa0b   : > { %p2694_p4 = scmp.lt.s32.totalorder %s2692_s26, %s2688_s20 }
 0xa0c   : > { %p2690_p12 = pnand %p2689_p8, %p2931_p10 }
 0xa0d   : > { %p2695_p13 = por %p2694_p4, %p2693_p9 }
 0xa0e   : > { %p2691_p0 = pneg %p2690_p12 }
 0xa10   : > { %p2696_p5 = pnand %p2695_p13, %p2691_p0 }
 0xa12   : > { %2699 = shalt.err (!%p2696_p5)
}
 0xa13   : > { %2490 = dma.vmem_to_hbm [thread:$0]  (%p2931_p10), %s2092_s13, 128, %s2089_s11, %s2078_s30  }
 0xa14 PF: > { %s3412_s18 = sld [smem:[#allocation18_spill]] }
 0xa15   : > { %s3413_s27 = sld [smem:[#allocation12_spill]] }
 0xa1a   : > { %p2504_p6 = scmp.ge.s32.totalorder %s3412_s18, 2 }
 0xa1b   : > { %s2103_s16 = sand.u32 1, %s3413_s27  }
 0xa1c   : > { %p2500_p7 = pnand %p2504_p6, %p2937_p11  ;;  %s2104_s24 = scalar_lea.sflag [#allocation5], %s2103_s16 }
 0xa1e   : > { %p2501_p3 = pneg %p2500_p7 }
 0xa20   : > { %2741 = dma.done.wait (%p2501_p3), %s2104_s24, 128  }
 0xa21   : > { %2743 = vsyncadd (%p2501_p3), %s2104_s24, 4294967168  ;;  %s32_s15 = sadd.s32 1, %s3412_s18   ;;  %s3415_s25 = sld [smem:[#allocation13_spill]] }
 0xa22   : > { %p29_p1 = scmp.ge.s32.totalorder %s32_s15, 6   ;;  %s3416_s26 = sld [smem:[#allocation14_spill]] }
 0xa23   : > { %s3417_s27 = sld [smem:[#allocation23_spill]] }
 0xa24   : > { %s3418_s28 = sld [smem:[#allocation16_spill]]  ;;  %31 = sbr.rel (!%p29_p1) target bundleno = 17 (0x11), region = 171 }
 0xa25   : > { %s3419_s29 = sld [smem:[#allocation17_spill]] }
 0xa26   : > { %s3420_s30 = sld [smem:[#allocation19_spill]] }
 0xa27   : > { %s3421_s14 = sld [smem:[#allocation20_spill]] }
 0xa29   :  { %2109 = vsyncpa [#allocation4], 1 }
 0xa2a   :  { %2111 = vsyncpa [#allocation4 + $0x1], 1 }
 0xa2b   :  { %2112 = vsyncpa [#allocation7], 1 }
 0xa2c   :  { %2114 = vsyncpa [#allocation7 + $0x1], 1 }
 0xa2d   :  { %2115 = vsyncpa [#allocation5], 1 }
 0xa2e   :  { %2117 = vsyncpa [#allocation5 + $0x1], 1 }

</bundles_post_ra>
